<compile_context>
chip_gen: v5e
topology: v5e:2x2
jax: 0.10.0
libtpu: 0.0.40
codegen_flags: <defaults>
</compile_context>

<pallas_src>
import jax
import jax.numpy as jnp
from jax.experimental import pallas as pl
from jax.experimental.pallas import tpu as pltpu

H1 = 256
H2 = 128


def cem_forward_kernel(x_ref, w1_ref, b1_ref, w2_ref, b2_ref, w3_ref, b3_ref,
                       o_ref):
    # Cast the input tile to the matmul compute dtype on the VPU (no-op for f32).
    x = x_ref[...].astype(w1_ref.dtype)
    # Layer 1: Linear(state_dim, 256) + ReLU   (f32 accumulation on the MXU)
    h1 = jnp.dot(x, w1_ref[...],
                 preferred_element_type=jnp.float32) + b1_ref[...]
    h1 = jnp.maximum(h1, 0.0)
    # Layer 2: Linear(256, 128) + ReLU
    h2 = jnp.dot(h1.astype(w2_ref.dtype), w2_ref[...],
                 preferred_element_type=jnp.float32) + b2_ref[...]
    h2 = jnp.maximum(h2, 0.0)
    # Layer 3: Linear(128, action_n)  (native width -> tanh only on live columns)
    logits = jnp.dot(h2.astype(w3_ref.dtype), w3_ref[...],
                     preferred_element_type=jnp.float32) + b3_ref[...]
    # (sigmoid(z) - 0.5) * 4  ==  2 * tanh(z / 2)   (single EUP tanh)
    o_ref[...] = (2.0 * jnp.tanh(0.5 * logits)).astype(o_ref.dtype)


def cem_forward(x, w1, b1, w2, b2, w3, b3, *, batch_tile=1024, use_bf16=True):
    """Fused MLP forward.

    batch_tile: rows per grid step (multiple of 8; 1024-2048 recommended).
    use_bf16:   bf16 matmul inputs with f32 accumulation (default); set False
                for exact f32 parity with the PyTorch module.
    """
    B, state_dim = x.shape
    action_n = w3.shape[1]
    h1_dim = w1.shape[1]
    h2_dim = w2.shape[1]

    compute_dtype = jnp.bfloat16 if use_bf16 else jnp.float32
    # Weights are tiny (~0.5 MB): cast once in the wrapper. Biases stay f32.
    # x stays in its HBM dtype and is cast per-tile inside the kernel.
    w1c = w1.astype(compute_dtype)
    w2c = w2.astype(compute_dtype)
    w3c = w3.astype(compute_dtype)

    # Tile selection: a single full-batch block if it fits, otherwise fixed
    # batch_tile blocks with a (masked) ragged last block — no wrapper jnp.pad.
    if B <= batch_tile:
        tile = B                      # block row dim == full array dim (legal)
    else:
        assert batch_tile % 8 == 0, "batch_tile must be a multiple of 8"
        tile = batch_tile
    num_tiles = pl.cdiv(B, tile)

    flops = 2 * B * (state_dim * h1_dim + h1_dim * h2_dim + h2_dim * action_n)
    bytes_accessed = int(
        x.size * x.dtype.itemsize
        + sum(a.size * a.dtype.itemsize
              for a in (w1c, b1, w2c, b2, w3c, b3))
        + B * action_n * 4)

    # Whole-array, VMEM-resident, non-pipelined spec for weights/biases
    # (no second pipeline buffer, no per-step DMA descriptors).
    resident = pl.BlockSpec(memory_space=pltpu.MemorySpace.VMEM)

    out = pl.pallas_call(
        cem_forward_kernel,
        out_shape=jax.ShapeDtypeStruct((B, action_n), jnp.float32),
        grid_spec=pltpu.PrefetchScalarGridSpec(
            num_scalar_prefetch=0,
            grid=(num_tiles,),
            in_specs=[
                pl.BlockSpec((tile, state_dim), lambda i: (i, 0)),  # x
                resident,  # w1
                resident,  # b1
                resident,  # w2
                resident,  # b2
                resident,  # w3
                resident,  # b3
            ],
            out_specs=pl.BlockSpec((tile, action_n), lambda i: (i, 0)),
        ),
        compiler_params=pltpu.CompilerParams(
            dimension_semantics=("parallel",)),
        cost_estimate=pl.CostEstimate(
            flops=flops,
            transcendentals=B * action_n,
            bytes_accessed=bytes_accessed),
    )(x, w1c, b1, w2c, b2, w3c, b3)

    return out


def init_params(key, state_dim, action_n):
    """Deterministic init mimicking nn.Linear default (uniform +-1/sqrt(fan_in)).

    Weights are stored as [in, out] (transposed vs. PyTorch's [out, in])."""
    ks = jax.random.split(key, 6)

    def linear(kw, kb, fan_in, fan_out):
        bound = 1.0 / jnp.sqrt(jnp.float32(fan_in))
        w = jax.random.uniform(kw, (fan_in, fan_out), jnp.float32,
                               -bound, bound)
        b = jax.random.uniform(kb, (1, fan_out), jnp.float32, -bound, bound)
        return w, b

    w1, b1 = linear(ks[0], ks[1], state_dim, H1)
    w2, b2 = linear(ks[2], ks[3], H1, H2)
    w3, b3 = linear(ks[4], ks[5], H2, action_n)
    return w1, b1, w2, b2, w3, b3


def cem_forward_ref(x, w1, b1, w2, b2, w3, b3):
    h1 = jnp.maximum(x @ w1 + b1, 0.0)
    h2 = jnp.maximum(h1 @ w2 + b2, 0.0)
    logits = h2 @ w3 + b3
    return (jax.nn.sigmoid(logits) - 0.5) * 4.0


# TODO(synk): update_policy / Adam optimizer step (training) is out of scope for
# this forward-pass kernel; the unused nn.Softmax attribute is not translated.

if __name__ == "__main__":
    state_dim = 32
    action_n = 8
    batch = 300  # not a multiple of the small tile below -> exercises masking

    key = jax.random.PRNGKey(0)
    k_params, k_x = jax.random.split(key)
    params = init_params(k_params, state_dim, action_n)
    x = jax.random.normal(k_x, (batch, state_dim), jnp.float32)
    ref = cem_forward_ref(x, *params)

    # Exact f32 path (matches the PyTorch module's numerics); single full-batch tile.
    out_f32 = jax.block_until_ready(cem_forward(x, *params, use_bf16=False))
    assert out_f32.shape == (batch, action_n)
    assert jnp.allclose(out_f32, ref, atol=1e-4, rtol=1e-4)

    # Default bf16 matmul-input path; small tile to exercise the multi-tile grid
    # with a ragged (masked) last block: 300 = 2*128 + 44.
    out_bf16 = jax.block_until_ready(
        cem_forward(x, *params, batch_tile=128))
    assert out_bf16.shape == (batch, action_n)
    assert bool(jnp.all(jnp.isfinite(out_bf16)))
    assert jnp.allclose(out_bf16, ref, atol=1e-1, rtol=1e-1)

    print("KERNEL_OK")
</pallas_src>

<mosaic_0001>
module attributes {stable_mosaic.version = 11 : i64} {
  func.func @cem_forward_kernel(%arg0: i32, %arg1: memref<300x32xf32, #tpu.memory_space<vmem>>, %arg2: memref<32x256xf32, #tpu.memory_space<vmem>>, %arg3: memref<1x256xf32, #tpu.memory_space<vmem>>, %arg4: memref<256x128xf32, #tpu.memory_space<vmem>>, %arg5: memref<1x128xf32, #tpu.memory_space<vmem>>, %arg6: memref<128x8xf32, #tpu.memory_space<vmem>>, %arg7: memref<1x8xf32, #tpu.memory_space<vmem>>, %arg8: memref<300x8xf32, #tpu.memory_space<vmem>>) attributes {dimension_semantics = [#tpu.dimension_semantics<parallel>], iteration_bounds = array<i64: 1>, scalar_prefetch = 0 : i64, scratch_operands = 0 : i64, tpu.core_type = #tpu.core_type<tc>, window_params = [{transform_indices = @transform_0, window_bounds = array<i64: 300, 32>}, {pipeline_mode = #tpu.pipeline_mode<synchronous>, transform_indices = @transform_1, window_bounds = array<i64: 32, 256>}, {pipeline_mode = #tpu.pipeline_mode<synchronous>, transform_indices = @transform_2, window_bounds = array<i64: 1, 256>}, {pipeline_mode = #tpu.pipeline_mode<synchronous>, transform_indices = @transform_3, window_bounds = array<i64: 256, 128>}, {pipeline_mode = #tpu.pipeline_mode<synchronous>, transform_indices = @transform_4, window_bounds = array<i64: 1, 128>}, {pipeline_mode = #tpu.pipeline_mode<synchronous>, transform_indices = @transform_5, window_bounds = array<i64: 128, 8>}, {pipeline_mode = #tpu.pipeline_mode<synchronous>, transform_indices = @transform_6, window_bounds = array<i64: 1, 8>}, {transform_indices = @transform_7, window_bounds = array<i64: 300, 8>}]} {
    %c0 = arith.constant 0 : index
    %c0_0 = arith.constant 0 : index
    %0 = vector.load %arg1[%c0, %c0_0] : memref<300x32xf32, #tpu.memory_space<vmem>>, vector<300x32xf32>
    %c0_1 = arith.constant 0 : index
    %c0_2 = arith.constant 0 : index
    %1 = vector.load %arg2[%c0_1, %c0_2] : memref<32x256xf32, #tpu.memory_space<vmem>>, vector<32x256xf32>
    %cst = arith.constant dense<0.000000e+00> : vector<300x256xf32>
    %2 = tpu.matmul %0, %1, %cst {dimension_numbers = #tpu.dot_dimension_numbers<[1], [0], [0], [1], [0, 0, 1, 1], [], []>} : vector<300x32xf32>, vector<32x256xf32>, vector<300x256xf32> -> vector<300x256xf32>
    %c0_3 = arith.constant 0 : index
    %c0_4 = arith.constant 0 : index
    %3 = vector.load %arg3[%c0_3, %c0_4] : memref<1x256xf32, #tpu.memory_space<vmem>>, vector<1x256xf32>
    %4 = vector.broadcast %3 : vector<1x256xf32> to vector<300x256xf32>
    %5 = arith.addf %2, %4 : vector<300x256xf32>
    %cst_5 = arith.constant 0.000000e+00 : f32
    %6 = vector.broadcast %cst_5 : f32 to vector<300x256xf32>
    %7 = arith.maximumf %5, %6 : vector<300x256xf32>
    %c0_6 = arith.constant 0 : index
    %c0_7 = arith.constant 0 : index
    %8 = vector.load %arg4[%c0_6, %c0_7] : memref<256x128xf32, #tpu.memory_space<vmem>>, vector<256x128xf32>
    %cst_8 = arith.constant dense<0.000000e+00> : vector<300x128xf32>
    %9 = tpu.matmul %7, %8, %cst_8 {dimension_numbers = #tpu.dot_dimension_numbers<[1], [0], [0], [1], [0, 0, 1, 1], [], []>} : vector<300x256xf32>, vector<256x128xf32>, vector<300x128xf32> -> vector<300x128xf32>
    %c0_9 = arith.constant 0 : index
    %c0_10 = arith.constant 0 : index
    %10 = vector.load %arg5[%c0_9, %c0_10] : memref<1x128xf32, #tpu.memory_space<vmem>>, vector<1x128xf32>
    %11 = vector.broadcast %10 : vector<1x128xf32> to vector<300x128xf32>
    %12 = arith.addf %9, %11 : vector<300x128xf32>
    %cst_11 = arith.constant 0.000000e+00 : f32
    %13 = vector.broadcast %cst_11 : f32 to vector<300x128xf32>
    %14 = arith.maximumf %12, %13 : vector<300x128xf32>
    %c0_12 = arith.constant 0 : index
    %c0_13 = arith.constant 0 : index
    %15 = vector.load %arg6[%c0_12, %c0_13] : memref<128x8xf32, #tpu.memory_space<vmem>>, vector<128x8xf32>
    %cst_14 = arith.constant dense<0.000000e+00> : vector<300x8xf32>
    %16 = tpu.matmul %14, %15, %cst_14 {dimension_numbers = #tpu.dot_dimension_numbers<[1], [0], [0], [1], [0, 0, 1, 1], [], []>} : vector<300x128xf32>, vector<128x8xf32>, vector<300x8xf32> -> vector<300x8xf32>
    %c0_15 = arith.constant 0 : index
    %c0_16 = arith.constant 0 : index
    %17 = vector.load %arg7[%c0_15, %c0_16] : memref<1x8xf32, #tpu.memory_space<vmem>>, vector<1x8xf32>
    %18 = vector.broadcast %17 : vector<1x8xf32> to vector<300x8xf32>
    %19 = arith.addf %16, %18 : vector<300x8xf32>
    %cst_17 = arith.constant 5.000000e-01 : f32
    %20 = vector.broadcast %cst_17 : f32 to vector<300x8xf32>
    %21 = arith.mulf %20, %19 : vector<300x8xf32>
    %22 = math.tanh %21 : vector<300x8xf32>
    %cst_18 = arith.constant 2.000000e+00 : f32
    %23 = vector.broadcast %cst_18 : f32 to vector<300x8xf32>
    %24 = arith.mulf %23, %22 : vector<300x8xf32>
    %c0_19 = arith.constant 0 : index
    %c0_20 = arith.constant 0 : index
    %25 = vector.load %arg8[%c0_19, %c0_20] : memref<300x8xf32, #tpu.memory_space<vmem>>, vector<300x8xf32>
    tpu.vector_store %arg8[%c0_19, %c0_20], %24 {strides = array<i32>} : memref<300x8xf32, #tpu.memory_space<vmem>>, vector<300x8xf32>,
    return
  }
  func.func @transform_0(%arg0: i32) -> (i32, i32) {
    %c0_i32 = arith.constant 0 : i32
    %c0_i32_0 = arith.constant 0 : i32
    return %arg0, %c0_i32 : i32, i32
  }
  func.func @transform_1(%arg0: i32) -> (i32, i32) {
    %c0_i32 = arith.constant 0 : i32
    %c0_i32_0 = arith.constant 0 : i32
    %c0_i32_1 = arith.constant 0 : i32
    return %c0_i32, %c0_i32_0 : i32, i32
  }
  func.func @transform_2(%arg0: i32) -> (i32, i32) {
    %c0_i32 = arith.constant 0 : i32
    %c0_i32_0 = arith.constant 0 : i32
    %c0_i32_1 = arith.constant 0 : i32
    return %c0_i32, %c0_i32_0 : i32, i32
  }
  func.func @transform_3(%arg0: i32) -> (i32, i32) {
    %c0_i32 = arith.constant 0 : i32
    %c0_i32_0 = arith.constant 0 : i32
    %c0_i32_1 = arith.constant 0 : i32
    return %c0_i32, %c0_i32_0 : i32, i32
  }
  func.func @transform_4(%arg0: i32) -> (i32, i32) {
    %c0_i32 = arith.constant 0 : i32
    %c0_i32_0 = arith.constant 0 : i32
    %c0_i32_1 = arith.constant 0 : i32
    return %c0_i32, %c0_i32_0 : i32, i32
  }
  func.func @transform_5(%arg0: i32) -> (i32, i32) {
    %c0_i32 = arith.constant 0 : i32
    %c0_i32_0 = arith.constant 0 : i32
    %c0_i32_1 = arith.constant 0 : i32
    return %c0_i32, %c0_i32_0 : i32, i32
  }
  func.func @transform_6(%arg0: i32) -> (i32, i32) {
    %c0_i32 = arith.constant 0 : i32
    %c0_i32_0 = arith.constant 0 : i32
    %c0_i32_1 = arith.constant 0 : i32
    return %c0_i32, %c0_i32_0 : i32, i32
  }
  func.func @transform_7(%arg0: i32) -> (i32, i32) {
    %c0_i32 = arith.constant 0 : i32
    %c0_i32_0 = arith.constant 0 : i32
    return %arg0, %c0_i32 : i32, i32
  }
}

</mosaic_0001>

<bundles_post_ra>
// kernel: tpu_custom_call.1
= control target key start
LH: loop header
LB: loop body
LE: loop exit
PB: predicated region body
PF: predicated region fallthrough
CT: control target
= control target key end

     0   :  { %vm78_vm0 = vcmask 261120   ;;  %vm1132_vm1 = vcmask 64512   ;;  %vm1170_vm2 = vcmask 60416   ;;  %s2370_s1 = inlined_call_operand.vmem [shape: f32[32,256], index: 1, kind: input, shape index: {}]   ;;  %s2371_s0 = inlined_call_operand.vmem [shape: f32[300,32], index: 0, kind: input, shape index: {}]   ;;  %s2372_s3 = inlined_call_operand.vmem [shape: f32[256,128], index: 3, kind: input, shape index: {}]   ;;  %s2373_s2 = inlined_call_operand.vmem [shape: f32[1,256], index: 2, kind: input, shape index: {}]   ;;  %s2374_s4 = inlined_call_operand.vmem [shape: f32[1,128], index: 4, kind: input, shape index: {}]   ;;  %s2375_s5 = inlined_call_operand.vmem [shape: f32[128,8], index: 5, kind: input, shape index: {}]   ;;  %s2376_s6 = inlined_call_operand.vmem [shape: f32[1,8], index: 6, kind: input, shape index: {}]   ;;  %s2377_s7 = inlined_call_operand.vmem [shape: f32[300,8], index: 7, kind: output, shape index: {}]  }
   0x1   :  { %v70_v0 = vld [vmem:[%s2370_s1 + $0x30] sm:$0xff]  ;;  %v68_v1 = vld [vmem:[%s2370_s1 + $0x20] sm:$0xff]  ;;  %v1418_v5 = vld [vmem:[%s2371_s0 + $0x58] sm:$0xff] }
   0x2   :  { %205 = vmatpush.msra.mxu0 %v70_v0  ;;  %1252 = vmatpush.msra.mxu1 %v70_v0  ;;  %v66_v2 = vld [vmem:[%s2370_s1 + $0x10] sm:$0xff]  ;;  %v64_v3 = vld [vmem:[%s2370_s1] sm:$0xff]  ;;  %v71_v6 = vld [vmem:[%s2370_s1 + $0x38] sm:$0xff] }
   0x3   :  { %1253 = vmatpush.msra.mxu2 %v70_v0  ;;  %1254 = vmatpush.msra.mxu3 %v70_v0  ;;  %v1413_v4 = vld [vmem:[%s2371_s0] sm:$0xff]  ;;  %v69_v7 = vld [vmem:[%s2370_s1 + $0x28] sm:$0xff]  ;;  %v67_v10 = vld [vmem:[%s2370_s1 + $0x18] sm:$0xff] }
   0x4   :  { %206 = vmatpush.msra.mxu0 %v68_v1  ;;  %1255 = vmatpush.msra.mxu1 %v68_v1  ;;  %v1433_v8 = vld [vmem:[%s2371_s0 + $0x8] sm:$0xff]  ;;  %v1438_v9 = vld [vmem:[%s2371_s0 + $0x60] sm:$0xff]  ;;  %v1450_v11 = vld [vmem:[%s2371_s0 + $0x10] sm:$0xff] }
   0x5   :  { %1256 = vmatpush.msra.mxu2 %v68_v1  ;;  %1257 = vmatpush.msra.mxu3 %v68_v1  ;;  %v1455_v12 = vld [vmem:[%s2371_s0 + $0x68] sm:$0xff]  ;;  %v1464_v13 = vld [vmem:[%s2371_s0 + $0xb0] sm:$0xff]  ;;  %v1471_v14 = vld [vmem:[%s2371_s0 + $0x18] sm:$0xff] }
   0x6   :  { %207 = vmatpush.msra.mxu0 %v66_v2  ;;  %1258 = vmatpush.msra.mxu1 %v66_v2  ;;  %v1476_v15 = vld [vmem:[%s2371_s0 + $0x70] sm:$0xff]  ;;  %v1485_v16 = vld [vmem:[%s2371_s0 + $0xb8] sm:$0xff]  ;;  %v1492_v17 = vld [vmem:[%s2371_s0 + $0x20] sm:$0xff] }
   0x7   :  { %1259 = vmatpush.msra.mxu2 %v66_v2  ;;  %1260 = vmatpush.msra.mxu3 %v66_v2  ;;  %v1497_v18 = vld [vmem:[%s2371_s0 + $0x78] sm:$0xff]  ;;  %v1506_v19 = vld [vmem:[%s2371_s0 + $0xc0] sm:$0xff]  ;;  %v65_v20 = vld [vmem:[%s2370_s1 + $0x8] sm:$0xff] }
   0x8   :  { %208 = vmatpush.msra.mxu0 %v64_v3  ;;  %1261 = vmatpush.msra.mxu1 %v64_v3  ;;  %v1516_v21 = vld [vmem:[%s2371_s0 + $0x28] sm:$0xff]  ;;  %v1521_v22 = vld [vmem:[%s2371_s0 + $0x80] sm:$0xff]  ;;  %v1537_v24 = vld [vmem:[%s2371_s0 + $0x30] sm:$0xff] }
   0x9   :  { %1176 = vmatmul.msk.f32.vlgmr.msra.gmra.mxu0 %vm78_vm0, %v1413_v4  ;;  %1187 = vmatmul.msk.f32.vlgmr.msra.gmra.mxu1 %vm78_vm0, %v1418_v5  ;;  %v1530_v23 = vld [vmem:[%s2371_s0 + $0xc8] sm:$0xff]  ;;  %v1551_v26 = vld [vmem:[%s2371_s0 + $0xd0] sm:$0xff]  ;;  %v1558_v27 = vld [vmem:[%s2371_s0 + $0x38] sm:$0xff] }
   0xa   :  { %336 = vmatpush.msrb.mxu1 %v71_v6  ;;  %1262 = vmatpush.msra.mxu2 %v64_v3  ;;  %v1542_v25 = vld [vmem:[%s2371_s0 + $0x88] sm:$0xff]  ;;  %v1563_v28 = vld [vmem:[%s2371_s0 + $0x90] sm:$0xff]  ;;  %v1572_v29 = vld [vmem:[%s2371_s0 + $0xd8] sm:$0xff] }
   0xb   :  { %1263 = vmatpush.msra.mxu3 %v64_v3  ;;  %1198 = vmatmul.msk.f32.vlgmr.msra.gmra.mxu2 %vm78_vm0, %v1464_v13  ;;  %v1579_v30 = vld [vmem:[%s2371_s0 + $0x40] sm:$0xff]  ;;  %v1584_v31 = vld [vmem:[%s2371_s0 + $0x98] sm:$0xff]  ;;  %v545_v34 = vld [vmem:[%s2372_s3 + $0x70] sm:$0xff] }
   0xc   :  { %337 = vmatpush.msrb.mxu1 %v69_v7  ;;  %v1593_v32 = vld [vmem:[%s2371_s0 + $0xe0] sm:$0xff]  ;;  %v546_v33 = vld [vmem:[%s2372_s3 + $0x78] sm:$0xff]  ;;  %v544_v35 = vld [vmem:[%s2372_s3 + $0x68] sm:$0xff] }
   0xd   :  { %567 = vmatpush.msrb.mxu2 %v546_v33  ;;  %v1609_v36 = vld [vmem:[%s2371_s0 + $0x48] sm:$0xff]  ;;  %v1614_v37 = vld [vmem:[%s2371_s0 + $0xa0] sm:$0xff]  ;;  %v542_v40 = vld [vmem:[%s2372_s3 + $0x58] sm:$0xff] }
   0xe   :  { %338 = vmatpush.msrb.mxu1 %v67_v10  ;;  %v543_v38 = vld [vmem:[%s2372_s3 + $0x60] sm:$0xff]  ;;  %v1626_v39 = vld [vmem:[%s2371_s0 + $0xe8] sm:$0xff]  ;;  %v541_v41 = vld [vmem:[%s2372_s3 + $0x50] sm:$0xff] }
   0xf   :  { %568 = vmatpush.msrb.mxu2 %v545_v34  ;;  %v540_v42 = vld [vmem:[%s2372_s3 + $0x48] sm:$0xff]  ;;  %v1642_v43 = vld [vmem:[%s2371_s0 + $0x50] sm:$0xff]  ;;  %v539_v45 = vld [vmem:[%s2372_s3 + $0x40] sm:$0xff] }
  0x10   :  { %339 = vmatpush.msrb.mxu1 %v65_v20  ;;  %v1647_v44 = vld [vmem:[%s2371_s0 + $0xa8] sm:$0xff]  ;;  %v1659_v46 = vld [vmem:[%s2371_s0 + $0xf0] sm:$0xff]  ;;  %v538_v47 = vld [vmem:[%s2372_s3 + $0x38] sm:$0xff] }
  0x11   :  { %1177 = vmatmul.msk.f32.gmra.mxu0 %vm78_vm0, %v1433_v8  ;;  %1188 = vmatmul.msk.f32.gmra.mxu1 %vm78_vm0, %v1438_v9  ;;  %v537_v48 = vld [vmem:[%s2372_s3 + $0x30] sm:$0xff]  ;;  %v536_v49 = vld [vmem:[%s2372_s3 + $0x28] sm:$0xff]  ;;  %v535_v50 = vld [vmem:[%s2372_s3 + $0x20] sm:$0xff] }
  0x12   :  { %569 = vmatpush.msrb.mxu2 %v544_v35  ;;  %v1680_v51 = vld [vmem:[%s2371_s0 + $0xf8] sm:$0xff]  ;;  %v533_v53 = vld [vmem:[%s2372_s3 + $0x10] sm:$0xff]  ;;  %v532_v54 = vld [vmem:[%s2372_s3 + $0x8] sm:$0xff] }
  0x13   :  { %1199 = vmatmul.msk.f32.gmra.mxu2 %vm78_vm0, %v1485_v16  ;;  %v534_v52 = vld [vmem:[%s2372_s3 + $0x18] sm:$0xff]  ;;  %v531_v55 = vld [vmem:[%s2372_s3] sm:$0xff]  ;;  %v561_v10 = vld [vmem:[%s2372_s3 + $0xf0] sm:$0xff] }
  0x14   :  { %570 = vmatpush.msrb.mxu2 %v543_v38  ;;  %v1705_v56 = vld [vmem:[%s2373_s2] sm:$0x3]  ;;  %v562_v3 = vld [vmem:[%s2372_s3 + $0xf8] sm:$0xff]  ;;  %v557_v34 = vld [vmem:[%s2372_s3 + $0xd0] sm:$0xff] }
  0x15   :  { %v1710_v57 = vperm.slane %v1705_v56, 0  ;;  %v1725_v2 = vld [vmem:[%s2371_s0 + $0x100] sm:$0xff]  ;;  %698 = vmatpush.msrb.mxu3 %v562_v3  ;;  %v558_v33 = vld [vmem:[%s2372_s3 + $0xd8] sm:$0xff]  ;;  %v1767_v35 = vld [vmem:[%s2371_s0 + $0x110] sm:$0xff] }
  0x16   :  { %571 = vmatpush.msrb.mxu2 %v542_v40  ;;  %1208 = vmatmul.msk.f32.vlgmr.msra.gmra.mxu3 %vm78_vm0, %v1725_v2  ;;  %v549_v3 = vld [vmem:[%s2372_s3 + $0x90] sm:$0xff] }
  0x17   :  { %699 = vmatpush.msrb.mxu3 %v561_v10 }
  0x18   :  { %572 = vmatpush.msrb.mxu2 %v541_v41 }
  0x19   :  { %1178 = vmatmul.msk.f32.gmra.mxu0 %vm78_vm0, %v1450_v11  ;;  %1189 = vmatmul.msk.f32.gmra.mxu1 %vm78_vm0, %v1455_v12 }
  0x1a   :  { %573 = vmatpush.msrb.mxu2 %v540_v42 }
  0x1b   :  { %1200 = vmatmul.msk.f32.gmra.mxu2 %vm78_vm0, %v1506_v19 }
  0x1c   :  { %574 = vmatpush.msrb.mxu2 %v539_v45  ;;  %v555_v45 = vld [vmem:[%s2372_s3 + $0xc0] sm:$0xff] }
  0x1e   :  { %575 = vmatpush.msrb.mxu2 %v538_v47  ;;  %v1785_v47 = vld [vmem:[%s2371_s0 + $0x118] sm:$0xff] }
  0x20   :  { %576 = vmatpush.msrb.mxu2 %v537_v48  ;;  %v554_v48 = vld [vmem:[%s2372_s3 + $0xb8] sm:$0xff] }
  0x21   :  { %1179 = vmatmul.msk.f32.gmra.mxu0 %vm78_vm0, %v1471_v14  ;;  %1190 = vmatmul.msk.f32.gmra.mxu1 %vm78_vm0, %v1476_v15 }
  0x22   :  { %577 = vmatpush.msrb.mxu2 %v536_v49 }
  0x23   :  { %1201 = vmatmul.msk.f32.gmra.mxu2 %vm78_vm0, %v1530_v23 }
  0x24   :  { %578 = vmatpush.msrb.mxu2 %v535_v50 }
  0x26   :  { %579 = vmatpush.msrb.mxu2 %v534_v52 }
  0x28   :  { %580 = vmatpush.msrb.mxu2 %v533_v53  ;;  %v553_v53 = vld [vmem:[%s2372_s3 + $0xb0] sm:$0xff] }
  0x29   :  { %1180 = vmatmul.msk.f32.gmra.mxu0 %vm78_vm0, %v1492_v17  ;;  %1191 = vmatmul.msk.f32.gmra.mxu1 %vm78_vm0, %v1497_v18 }
  0x2a   :  { %581 = vmatpush.msrb.mxu2 %v532_v54  ;;  %v552_v54 = vld [vmem:[%s2372_s3 + $0xa8] sm:$0xff] }
  0x2b   :  { %1202 = vmatmul.msk.f32.gmra.mxu2 %vm78_vm0, %v1551_v26 }
  0x2c   :  { %582 = vmatpush.msrb.mxu2 %v531_v55  ;;  %v1806_v55 = vld [vmem:[%s2371_s0 + $0x120] sm:$0xff] }
  0x31   :  { %1181 = vmatmul.msk.f32.gmra.mxu0 %vm78_vm0, %v1516_v21  ;;  %1192 = vmatmul.msk.f32.gmra.mxu1 %vm78_vm0, %v1521_v22 }
  0x33   :  { %1203 = vmatmul.msk.f32.gmra.mxu2 %vm78_vm0, %v1572_v29 }
  0x39   :  { %1182 = vmatmul.msk.f32.gmra.mxu0 %vm78_vm0, %v1537_v24  ;;  %1193 = vmatmul.msk.f32.gmra.mxu1 %vm78_vm0, %v1542_v25 }
  0x3b   :  { %1204 = vmatmul.msk.f32.gmra.mxu2 %vm78_vm0, %v1593_v32 }
  0x41   :  { %1183 = vmatmul.msk.f32.gmra.mxu0 %vm78_vm0, %v1558_v27  ;;  %1194 = vmatmul.msk.f32.gmra.mxu1 %vm78_vm0, %v1563_v28 }
  0x43   :  { %1205 = vmatmul.msk.f32.gmra.mxu2 %vm78_vm0, %v1626_v39 }
  0x49   :  { %1184 = vmatmul.msk.f32.gmra.mxu0 %vm78_vm0, %v1579_v30  ;;  %1195 = vmatmul.msk.f32.gmra.mxu1 %vm78_vm0, %v1584_v31 }
  0x4b   :  { %1206 = vmatmul.msk.f32.gmra.mxu2 %vm78_vm0, %v1659_v46 }
  0x51   :  { %1185 = vmatmul.msk.f32.gmra.mxu0 %vm78_vm0, %v1609_v36  ;;  %1196 = vmatmul.msk.f32.gmra.mxu1 %vm78_vm0, %v1614_v37 }
  0x53   :  { %1207 = vmatmul.msk.f32.gmra.mxu2 %vm78_vm0, %v1680_v51 }
  0x59   :  { %1186 = vmatmul.msk.f32.gmra.mxu0 %vm78_vm0, %v1642_v43  ;;  %1197 = vmatmul.msk.f32.gmra.mxu1 %vm78_vm0, %v1647_v44 }
  0x61   :  { %1214 = vmatmul.msk.f32.vlgmr.msrb.gmra.mxu1 %vm78_vm0, %v1413_v4 }
  0x69   :  { %1215 = vmatmul.msk.f32.gmra.mxu1 %vm78_vm0, %v1433_v8 }
  0x71   :  { %1216 = vmatmul.msk.f32.gmra.mxu1 %vm78_vm0, %v1450_v11  ;;  %v560_v11 = vld [vmem:[%s2372_s3 + $0xe8] sm:$0xff] }
  0x72   :  { %700 = vmatpush.msrb.mxu3 %v560_v11 }
  0x79   :  { %1217 = vmatmul.msk.f32.gmra.mxu1 %vm78_vm0, %v1471_v14  ;;  %v1746_v14 = vld [vmem:[%s2371_s0 + $0x108] sm:$0xff] }
  0x7a   :  { %1209 = vmatmul.msk.f32.gmra.mxu3 %vm78_vm0, %v1746_v14 }
  0x81   :  { %1218 = vmatmul.msk.f32.gmra.mxu1 %vm78_vm0, %v1492_v17  ;;  %v559_v17 = vld [vmem:[%s2372_s3 + $0xe0] sm:$0xff] }
  0x82   :  { %701 = vmatpush.msrb.mxu3 %v559_v17 }
  0x83   :  { %1210 = vmatmul.msk.f32.gmra.mxu3 %vm78_vm0, %v1767_v35 }
  0x84   :  { %702 = vmatpush.msrb.mxu3 %v558_v33 }
  0x86   :  { %v210_v58 = vpop.f32.mrf.mxu0  ;;  %v1712_v59 = vpop.f32.mrf.mxu1  ;;  %703 = vmatpush.msrb.mxu3 %v557_v34 }
  0x87   :  { %v211_v60 = vadd.f32 %v210_v58, %v1710_v57 }
  0x89   :  { %v455_v61 = vmax.f32 %v211_v60, 0.0  ;;  %1219 = vmatmul.msk.f32.gmra.mxu1 %vm78_vm0, %v1516_v21 }
  0x8b   :  { %583 = vmatmul.f32.vlgmr.msrb.gmra.mxu2 %v455_v61  ;;  %1211 = vmatmul.msk.f32.gmra.mxu3 %vm78_vm0, %v1785_v47 }
  0x8e   :  { %v213_v62 = vpop.f32.mrf.mxu0  ;;  %v1717_v63 = vpop.f32.mrf.mxu1 }
  0x8f   :  { %v214_v0 = vadd.f32 %v213_v62, %v1710_v57  ;;  %v1813_v58 = vpop.f32.mrf.mxu2 }
  0x91   :  { %1220 = vmatmul.msk.f32.gmra.mxu1 %vm78_vm0, %v1537_v24  ;;  %v457_v1 = vmax.f32 %v214_v0, 0.0 }
  0x93   :  { %586 = vmatmul.f32.gmra.mxu2 %v457_v1  ;;  %1212 = vmatmul.msk.f32.gmra.mxu3 %vm78_vm0, %v1806_v55  ;;  %v550_v1 = vld [vmem:[%s2372_s3 + $0x98] sm:$0xff] }
  0x96   :  { %v216_v4 = vpop.f32.mrf.mxu0  ;;  %v1732_v6 = vpop.f32.mrf.mxu1 }
  0x97   :  { %v217_v7 = vadd.f32 %v216_v4, %v1710_v57  ;;  %v1829_v4 = vld [vmem:[%s2371_s0 + $0x128] sm:$0xf]  ;;  %v1839_v11 = vpop.f32.mrf.mxu2 }
  0x99   :  { %1221 = vmatmul.msk.f32.gmra.mxu1 %vm78_vm0, %v1558_v27  ;;  %v459_v8 = vmax.f32 %v217_v7, 0.0 }
  0x9b   :  { %589 = vmatmul.f32.gmra.mxu2 %v459_v8  ;;  %1213 = vmatmul.msk.f32.gmra.mxu3 %vm78_vm0, %v1829_v4 }
  0x9e   :  { %v219_v20 = vpop.f32.mrf.mxu0  ;;  %v1753_v21 = vpop.f32.mrf.mxu1 }
  0x9f   :  { %v220_v24 = vadd.f32 %v219_v20, %v1710_v57  ;;  %v547_v20 = vld [vmem:[%s2372_s3 + $0x80] sm:$0xff] }
  0xa1   :  { %1222 = vmatmul.msk.f32.gmra.mxu1 %vm78_vm0, %v1579_v30  ;;  %v461_v27 = vmax.f32 %v220_v24, 0.0  ;;  %v556_v30 = vld [vmem:[%s2372_s3 + $0xc8] sm:$0xff] }
  0xa2   :  { %704 = vmatpush.msrb.mxu3 %v556_v30  ;;  %v1851_v30 = vpop.f32.mrf.mxu2 }
  0xa3   :  { %592 = vmatmul.f32.gmra.mxu2 %v461_v27 }
  0xa4   :  { %705 = vmatpush.msrb.mxu3 %v555_v45 }
  0xa6   :  { %v222_v38 = vpop.f32.mrf.mxu0  ;;  %v1774_v40 = vpop.f32.mrf.mxu1  ;;  %706 = vmatpush.msrb.mxu3 %v554_v48 }
  0xa7   :  { %v223_v41 = vadd.f32 %v222_v38, %v1710_v57 }
  0xa8   :  { %707 = vmatpush.msrb.mxu3 %v553_v53 }
  0xa9   :  { %1223 = vmatmul.msk.f32.gmra.mxu1 %vm78_vm0, %v1609_v36  ;;  %v463_v42 = vmax.f32 %v223_v41, 0.0 }
  0xaa   :  { %708 = vmatpush.msrb.mxu3 %v552_v54  ;;  %v1858_v45 = vpop.f32.mrf.mxu2 }
  0xab   :  { %595 = vmatmul.f32.gmra.mxu2 %v463_v42 }
  0xae   :  { %v225_v36 = vpop.f32.mrf.mxu0  ;;  %v1792_v49 = vpop.f32.mrf.mxu1 }
  0xaf   :  { %v226_v50 = vadd.f32 %v225_v36, %v1710_v57 }
  0xb1   :  { %1224 = vmatmul.msk.f32.gmra.mxu1 %vm78_vm0, %v1642_v43  ;;  %v465_v52 = vmax.f32 %v226_v50, 0.0  ;;  %v551_v43 = vld [vmem:[%s2372_s3 + $0xa0] sm:$0xff] }
  0xb2   :  { %709 = vmatpush.msrb.mxu3 %v551_v43  ;;  %v1870_v53 = vpop.f32.mrf.mxu2 }
  0xb3   :  { %598 = vmatmul.f32.gmra.mxu2 %v465_v52  ;;  %v1866_v52 = vperm.slane %v1705_v56, 1 }
  0xb4   :  { %710 = vmatpush.msrb.mxu3 %v550_v1 }
  0xb6   :  { %v228_v60 = vpop.f32.mrf.mxu0  ;;  %v1815_v61 = vpop.f32.mrf.mxu1  ;;  %711 = vmatpush.msrb.mxu3 %v549_v3 }
  0xb7   :  { %v229_v62 = vadd.f32 %v228_v60, %v1710_v57 }
  0xb9   :  { %1225 = vmatmul.msk.f32.gmra.mxu1 %vm78_vm0, %v1418_v5  ;;  %v467_v0 = vmax.f32 %v229_v62, 0.0  ;;  %v548_v5 = vld [vmem:[%s2372_s3 + $0x88] sm:$0xff] }
  0xba   :  { %712 = vmatpush.msrb.mxu3 %v548_v5 }
  0xbb   :  { %601 = vmatmul.f32.gmra.mxu2 %v467_v0  ;;  %v1877_v0 = vpop.f32.mrf.mxu2 }
  0xbc   :  { %713 = vmatpush.msrb.mxu3 %v547_v20 }
  0xbe   :  { %v231_v7 = vpop.f32.mrf.mxu0  ;;  %v1836_v8 = vpop.f32.mrf.mxu1 }
  0xbf   :  { %v232_v10 = vadd.f32 %v231_v7, %v1710_v57 }
  0xc1   :  { %1226 = vmatmul.msk.f32.gmra.mxu1 %vm78_vm0, %v1438_v9  ;;  %v469_v17 = vmax.f32 %v232_v10, 0.0 }
  0xc3   :  { %604 = vmatmul.f32.gmra.mxu2 %v469_v17  ;;  %v1885_v10 = vpop.f32.mrf.mxu2 }
  0xc6   :  { %v234_v24 = vpop.f32.mrf.mxu0  ;;  %v1846_v27 = vpop.f32.mrf.mxu1 }
  0xc7   :  { %v235_v33 = vadd.f32 %v234_v24, %v1710_v57 }
  0xc9   :  { %1227 = vmatmul.msk.f32.gmra.mxu1 %vm78_vm0, %v1455_v12  ;;  %v471_v34 = vmax.f32 %v235_v33, 0.0 }
  0xcb   :  { %607 = vmatmul.f32.gmra.mxu2 %v471_v34  ;;  %v1894_v34 = vpop.f32.mrf.mxu2 }
  0xce   :  { %v237_v9 = vpop.f32.mrf.mxu0  ;;  %v1853_v38 = vpop.f32.mrf.mxu1 }
  0xcf   :  { %v238_v41 = vadd.f32 %v237_v9, %v1710_v57 }
  0xd1   :  { %1228 = vmatmul.msk.f32.gmra.mxu1 %vm78_vm0, %v1476_v15  ;;  %v473_v42 = vmax.f32 %v238_v41, 0.0  ;;  %v244_v15 = vadd.f32 %v1712_v59, %v1710_v57 }
  0xd3   :  { %610 = vmatmul.f32.gmra.mxu2 %v473_v42  ;;  %v477_v62 = vmax.f32 %v244_v15, 0.0 }
  0xd6   :  { %v240_v48 = vpop.f32.mrf.mxu0  ;;  %v1860_v36 = vpop.f32.mrf.mxu1 }
  0xd7   :  { %v241_v12 = vadd.f32 %v240_v48, %v1710_v57  ;;  %v259_v48 = vadd.f32 %v1792_v49, %v1710_v57  ;;  %v880_v49 = vld [vmem:[%s2375_s5 + $0x68] sm:$0xff] }
  0xd9   :  { %1229 = vmatmul.msk.f32.gmra.mxu1 %vm78_vm0, %v1497_v18  ;;  %v475_v50 = vmax.f32 %v241_v12, 0.0  ;;  %v247_v18 = vadd.f32 %v1717_v63, %v1710_v57  ;;  %v487_v15 = vmax.f32 %v259_v48, 0.0 }
  0xdb   :  { %613 = vmatmul.f32.gmra.mxu2 %v475_v50  ;;  %v479_v1 = vmax.f32 %v247_v18, 0.0 }
  0xde   :  { %v341_v54 = vpop.f32.mrf.mxu1 }
  0xdf   :  { %v342_v43 = vadd.f32 %v341_v54, %v1866_v52 }
  0xe1   :  { %v456_v60 = vmax.f32 %v342_v43, 0.0  ;;  %1230 = vmatmul.msk.f32.gmra.mxu1 %vm78_vm0, %v1521_v22  ;;  %v250_v22 = vadd.f32 %v1732_v6, %v1710_v57  ;;  %v262_v43 = vadd.f32 %v1815_v61, %v1710_v57  ;;  %v265_v61 = vadd.f32 %v1836_v8, %v1710_v57  ;;  %v877_v8 = vld [vmem:[%s2375_s5 + $0x50] sm:$0xff] }
  0xe3   :  { %616 = vmatmul.f32.gmra.mxu2 %v477_v62  ;;  %714 = vmatmul.f32.vlgmr.msrb.gmra.mxu3 %v456_v60  ;;  %v481_v63 = vmax.f32 %v250_v22, 0.0  ;;  %v878_v22 = vld [vmem:[%s2375_s5 + $0x58] sm:$0xff] }
  0xe6   :  { %v344_v56 = vpop.f32.mrf.mxu1 }
  0xe7   :  { %v345_v59 = vadd.f32 %v344_v56, %v1866_v52  ;;  %v489_v56 = vmax.f32 %v262_v43, 0.0 }
  0xe9   :  { %1231 = vmatmul.msk.f32.gmra.mxu1 %vm78_vm0, %v1542_v25  ;;  %v458_v3 = vmax.f32 %v345_v59, 0.0  ;;  %v253_v25 = vadd.f32 %v1753_v21, %v1710_v57  ;;  %v879_v59 = vld [vmem:[%s2375_s5 + $0x60] sm:$0xff] }
  0xeb   :  { %619 = vmatmul.f32.gmra.mxu2 %v479_v1  ;;  %717 = vmatmul.f32.gmra.mxu3 %v458_v3  ;;  %v483_v33 = vmax.f32 %v253_v25, 0.0 }
  0xee   :  { %v347_v5 = vpop.f32.mrf.mxu1 }
  0xef   :  { %v348_v7 = vadd.f32 %v347_v5, %v1866_v52 }
  0xf1   :  { %1232 = vmatmul.msk.f32.gmra.mxu1 %vm78_vm0, %v1563_v28  ;;  %v460_v17 = vmax.f32 %v348_v7, 0.0  ;;  %v256_v28 = vadd.f32 %v1774_v40, %v1710_v57  ;;  %v1906_v40 = vpop.f32.mrf.mxu2 }
  0xf3   :  { %622 = vmatmul.f32.gmra.mxu2 %v481_v63  ;;  %720 = vmatmul.f32.gmra.mxu3 %v460_v17  ;;  %v485_v42 = vmax.f32 %v256_v28, 0.0  ;;  %v268_v63 = vadd.f32 %v1846_v27, %v1710_v57  ;;  %v271_v27 = vadd.f32 %v1853_v38, %v1710_v57  ;;  %v874_v38 = vld [vmem:[%s2375_s5 + $0x38] sm:$0xff] }
  0xf6   :  { %v350_v20 = vpop.f32.mrf.mxu1 }
  0xf7   :  { %v351_v24 = vadd.f32 %v350_v20, %v1866_v52  ;;  %v493_v20 = vmax.f32 %v268_v63, 0.0 }
  0xf9   :  { %1233 = vmatmul.msk.f32.gmra.mxu1 %vm78_vm0, %v1584_v31  ;;  %v462_v6 = vmax.f32 %v351_v24, 0.0  ;;  %v882_v31 = vld [vmem:[%s2375_s5 + $0x78] sm:$0xff]  ;;  %v1919_v62 = vpop.f32.mrf.mxu2  ;;  %v876_v24 = vld [vmem:[%s2375_s5 + $0x48] sm:$0xff] }
  0xfa   :  { %887 = vmatpush.msrb.mxu0 %v882_v31  ;;  %1264 = vmatpush.msra.mxu3 %v882_v31 }
  0xfb   :  { %625 = vmatmul.f32.gmra.mxu2 %v483_v33  ;;  %723 = vmatmul.f32.gmra.mxu3 %v462_v6 }
  0xfe   :  { %v353_v9 = vpop.f32.mrf.mxu1 }
  0xff   :  { %v354_v41 = vadd.f32 %v353_v9, %v1866_v52  ;;  %v495_v9 = vmax.f32 %v271_v27, 0.0 }
 0x101   :  { %1234 = vmatmul.msk.f32.gmra.mxu1 %vm78_vm0, %v1614_v37  ;;  %v464_v21 = vmax.f32 %v354_v41, 0.0  ;;  %v881_v37 = vld [vmem:[%s2375_s5 + $0x70] sm:$0xff] }
 0x102   :  { %888 = vmatpush.msrb.mxu0 %v881_v37  ;;  %1265 = vmatpush.msra.mxu3 %v881_v37  ;;  %v873_v37 = vld [vmem:[%s2375_s5 + $0x30] sm:$0xff] }
 0x103   :  { %628 = vmatmul.f32.gmra.mxu2 %v485_v42  ;;  %726 = vmatmul.f32.gmra.mxu3 %v464_v21  ;;  %v1958_v42 = vpop.f32.mrf.mxu3  ;;  %v274_v21 = vadd.f32 %v1860_v36, %v1710_v57  ;;  %v277_v36 = vadd.f32 %v1813_v58, %v1710_v57  ;;  %v280_v58 = vadd.f32 %v1839_v11, %v1710_v57  ;;  %v870_v11 = vld [vmem:[%s2375_s5 + $0x18] sm:$0xff] }
 0x104   :  { %889 = vmatpush.msrb.mxu0 %v880_v49  ;;  %1266 = vmatpush.msra.mxu3 %v880_v49 }
 0x106   :  { %v356_v12 = vpop.f32.mrf.mxu1  ;;  %890 = vmatpush.msrb.mxu0 %v879_v59  ;;  %1267 = vmatpush.msra.mxu3 %v879_v59 }
 0x107   :  { %v357_v50 = vadd.f32 %v356_v12, %v1866_v52 }
 0x108   :  { %891 = vmatpush.msrb.mxu0 %v878_v22  ;;  %1268 = vmatpush.msra.mxu3 %v878_v22  ;;  %v283_v22 = vadd.f32 %v1851_v30, %v1710_v57  ;;  %v867_v30 = vld [vmem:[%s2375_s5] sm:$0xff] }
 0x109   :  { %1235 = vmatmul.msk.f32.gmra.mxu1 %vm78_vm0, %v1647_v44  ;;  %v466_v54 = vmax.f32 %v357_v50, 0.0 }
 0x10a   :  { %892 = vmatpush.msrb.mxu0 %v877_v8  ;;  %1269 = vmatpush.msra.mxu3 %v877_v8  ;;  %v868_v8 = vld [vmem:[%s2375_s5 + $0x8] sm:$0xff]  ;;  %v503_v63 = vmax.f32 %v283_v22, 0.0 }
 0x10b   :  { %631 = vmatmul.f32.gmra.mxu2 %v487_v15  ;;  %729 = vmatmul.f32.gmra.mxu3 %v466_v54  ;;  %v1975_v15 = vpop.f32.mrf.mxu3 }
 0x10c   :  { %893 = vmatpush.msrb.mxu0 %v876_v24  ;;  %1270 = vmatpush.msra.mxu3 %v876_v24 }
 0x10e   :  { %v359_v60 = vpop.f32.mrf.mxu1  ;;  %v1933_v5 = vpop.f32.mrf.mxu2 }
 0x10f   :  { %v360_v18 = vadd.f32 %v359_v60, %v1866_v52 }
 0x111   :  { %1236 = vmatmul.msk.f32.gmra.mxu1 %vm78_vm0, %v1464_v13  ;;  %v468_v44 = vmax.f32 %v360_v18, 0.0  ;;  %v491_v13 = vmax.f32 %v265_v61, 0.0  ;;  %v872_v18 = vld [vmem:[%s2375_s5 + $0x28] sm:$0xff]  ;;  %v501_v61 = vmax.f32 %v280_v58, 0.0 }
 0x113   :  { %634 = vmatmul.f32.gmra.mxu2 %v489_v56  ;;  %732 = vmatmul.f32.gmra.mxu3 %v468_v44  ;;  %v1988_v59 = vpop.f32.mrf.mxu3 }
 0x116   :  { %v362_v1 = vpop.f32.mrf.mxu1  ;;  %v1948_v33 = vpop.f32.mrf.mxu2 }
 0x117   :  { %v363_v3 = vadd.f32 %v362_v1, %v1866_v52 }
 0x119   :  { %1237 = vmatmul.msk.f32.gmra.mxu1 %vm78_vm0, %v1485_v16  ;;  %v470_v7 = vmax.f32 %v363_v3, 0.0  ;;  %v871_v3 = vld [vmem:[%s2375_s5 + $0x20] sm:$0xff] }
 0x11b   :  { %637 = vmatmul.f32.gmra.mxu2 %v491_v13  ;;  %735 = vmatmul.f32.gmra.mxu3 %v470_v7 }
 0x11e   :  { %v365_v17 = vpop.f32.mrf.mxu1  ;;  %v1965_v31 = vpop.f32.mrf.mxu2 }
 0x11f   :  { %v366_v25 = vadd.f32 %v365_v17, %v1866_v52 }
 0x121   :  { %1238 = vmatmul.msk.f32.gmra.mxu1 %vm78_vm0, %v1506_v19  ;;  %v472_v16 = vmax.f32 %v366_v25, 0.0  ;;  %v875_v19 = vld [vmem:[%s2375_s5 + $0x40] sm:$0xff]  ;;  %v2011_v25 = vpop.f32.mrf.mxu3 }
 0x122   :  { %894 = vmatpush.msrb.mxu0 %v875_v19  ;;  %1271 = vmatpush.msra.mxu3 %v875_v19  ;;  %v289_v19 = vadd.f32 %v1870_v53, %v1710_v57 }
 0x123   :  { %640 = vmatmul.f32.gmra.mxu2 %v493_v20  ;;  %738 = vmatmul.f32.gmra.mxu3 %v472_v16  ;;  %v286_v16 = vadd.f32 %v1858_v45, %v1710_v57 }
 0x124   :  { %895 = vmatpush.msrb.mxu0 %v874_v38  ;;  %1272 = vmatpush.msra.mxu3 %v874_v38  ;;  %v507_v38 = vmax.f32 %v289_v19, 0.0 }
 0x125   :  { %v505_v27 = vmax.f32 %v286_v16, 0.0 }
 0x126   :  { %v368_v6 = vpop.f32.mrf.mxu1  ;;  %896 = vmatpush.msrb.mxu0 %v873_v37  ;;  %1273 = vmatpush.msra.mxu3 %v873_v37  ;;  %v1977_v49 = vpop.f32.mrf.mxu2 }
 0x127   :  { %v369_v28 = vadd.f32 %v368_v6, %v1866_v52 }
 0x128   :  { %897 = vmatpush.msrb.mxu0 %v872_v18  ;;  %1274 = vmatpush.msra.mxu3 %v872_v18 }
 0x129   :  { %1239 = vmatmul.msk.f32.gmra.mxu1 %vm78_vm0, %v1530_v23  ;;  %v474_v41 = vmax.f32 %v369_v28, 0.0  ;;  %v497_v23 = vmax.f32 %v274_v21, 0.0  ;;  %v2023_v28 = vpop.f32.mrf.mxu3 }
 0x12a   :  { %898 = vmatpush.msrb.mxu0 %v871_v3  ;;  %1275 = vmatpush.msra.mxu3 %v871_v3 }
 0x12b   :  { %643 = vmatmul.f32.gmra.mxu2 %v495_v9  ;;  %741 = vmatmul.f32.gmra.mxu3 %v474_v41 }
 0x12c   :  { %899 = vmatpush.msrb.mxu0 %v870_v11  ;;  %1276 = vmatpush.msra.mxu3 %v870_v11 }
 0x12e   :  { %v371_v48 = vpop.f32.mrf.mxu1  ;;  %v1990_v1 = vpop.f32.mrf.mxu2 }
 0x12f   :  { %v372_v12 = vadd.f32 %v371_v48, %v1866_v52 }
 0x131   :  { %1240 = vmatmul.msk.f32.gmra.mxu1 %vm78_vm0, %v1551_v26  ;;  %v476_v50 = vmax.f32 %v372_v12, 0.0  ;;  %v499_v26 = vmax.f32 %v277_v36, 0.0  ;;  %v2034_v48 = vpop.f32.mrf.mxu3 }
 0x133   :  { %646 = vmatmul.f32.gmra.mxu2 %v497_v23  ;;  %744 = vmatmul.f32.gmra.mxu3 %v476_v50  ;;  %v2042_v50 = vld [vmem:[%s2374_s4] ss:$0 sm:$0xff] }
 0x136   :  { %v374_v54 = vpop.f32.mrf.mxu1  ;;  %v2016_v20 = vpop.f32.mrf.mxu2 }
 0x137   :  { %v375_v43 = vadd.f32 %v374_v54, %v1866_v52 }
 0x139   :  { %1241 = vmatmul.msk.f32.gmra.mxu1 %vm78_vm0, %v1572_v29  ;;  %v478_v60 = vmax.f32 %v375_v43, 0.0 }
 0x13b   :  { %649 = vmatmul.f32.gmra.mxu2 %v499_v26  ;;  %747 = vmatmul.f32.gmra.mxu3 %v478_v60 }
 0x13e   :  { %v377_v56 = vpop.f32.mrf.mxu1  ;;  %v2027_v9 = vpop.f32.mrf.mxu2 }
 0x13f   :  { %v378_v44 = vadd.f32 %v377_v56, %v1866_v52 }
 0x141   :  { %1242 = vmatmul.msk.f32.gmra.mxu1 %vm78_vm0, %v1593_v32  ;;  %v480_v29 = vmax.f32 %v378_v44, 0.0  ;;  %v869_v32 = vld [vmem:[%s2375_s5 + $0x10] sm:$0xff] }
 0x142   :  { %900 = vmatpush.msrb.mxu0 %v869_v32  ;;  %1277 = vmatpush.msra.mxu3 %v869_v32 }
 0x143   :  { %652 = vmatmul.f32.gmra.mxu2 %v501_v61  ;;  %750 = vmatmul.f32.gmra.mxu3 %v480_v29 }
 0x144   :  { %901 = vmatpush.msrb.mxu0 %v868_v8  ;;  %1278 = vmatpush.msra.mxu3 %v868_v8 }
 0x146   :  { %v380_v13 = vpop.f32.mrf.mxu1  ;;  %902 = vmatpush.msrb.mxu0 %v867_v30  ;;  %1279 = vmatpush.msra.mxu3 %v867_v30  ;;  %v2036_v23 = vpop.f32.mrf.mxu2 }
 0x147   :  { %v381_v7 = vadd.f32 %v380_v13, %v1866_v52 }
 0x149   :  { %1243 = vmatmul.msk.f32.gmra.mxu1 %vm78_vm0, %v1626_v39  ;;  %v482_v17 = vmax.f32 %v381_v7, 0.0 }
 0x14b   :  { %655 = vmatmul.f32.gmra.mxu2 %v503_v63  ;;  %753 = vmatmul.f32.gmra.mxu3 %v482_v17 }
 0x14e   :  { %v383_v24 = vpop.f32.mrf.mxu1  ;;  %v2051_v58 = vpop.f32.mrf.mxu2 }
 0x14f   :  { %v384_v39 = vadd.f32 %v383_v24, %v1866_v52 }
 0x151   :  { %v484_v6 = vmax.f32 %v384_v39, 0.0  ;;  %1244 = vmatmul.msk.f32.gmra.mxu1 %vm78_vm0, %v1659_v46  ;;  %v292_v46 = vadd.f32 %v1877_v0, %v1710_v57  ;;  %v295_v0 = vadd.f32 %v1885_v10, %v1710_v57  ;;  %v298_v10 = vadd.f32 %v1894_v34, %v1710_v57 }
 0x152   :  { %v301_v34 = vadd.f32 %v1906_v40, %v1710_v57  ;;  %v304_v40 = vadd.f32 %v1919_v62, %v1710_v57  ;;  %v307_v62 = vadd.f32 %v1958_v42, %v1710_v57  ;;  %v310_v42 = vadd.f32 %v1975_v15, %v1710_v57 }
 0x153   :  { %658 = vmatmul.f32.gmra.mxu2 %v505_v27  ;;  %756 = vmatmul.f32.gmra.mxu3 %v484_v6  ;;  %v509_v37 = vmax.f32 %v292_v46, 0.0  ;;  %v511_v18 = vmax.f32 %v295_v0, 0.0  ;;  %v513_v11 = vmax.f32 %v298_v10, 0.0 }
 0x154   :  { %v515_v17 = vmax.f32 %v301_v34, 0.0  ;;  %v517_v19 = vmax.f32 %v304_v40, 0.0 }
 0x156   :  { %v386_v41 = vpop.f32.mrf.mxu1  ;;  %v2062_v13 = vpop.f32.mrf.mxu2 }
 0x157   :  { %v387_v45 = vadd.f32 %v386_v41, %v1866_v52 }
 0x159   :  { %v486_v21 = vmax.f32 %v387_v45, 0.0  ;;  %1245 = vmatmul.msk.f32.gmra.mxu1 %vm78_vm0, %v1680_v51  ;;  %v585_v51 = vadd.f32 %v2042_v50, %v1933_v5  ;;  %v588_v5 = vadd.f32 %v2042_v50, %v1948_v33  ;;  %v591_v33 = vadd.f32 %v2042_v50, %v1965_v31 }
 0x15a   :  { %v594_v31 = vadd.f32 %v2042_v50, %v1977_v49  ;;  %v597_v49 = vadd.f32 %v2042_v50, %v1990_v1  ;;  %v600_v1 = vadd.f32 %v2042_v50, %v2016_v20  ;;  %v313_v20 = vadd.f32 %v1988_v59, %v1710_v57 }
 0x15b   :  { %661 = vmatmul.f32.gmra.mxu2 %v507_v38  ;;  %759 = vmatmul.f32.gmra.mxu3 %v486_v21 }
 0x15c   :  { %v523_v10 = vmax.f32 %v313_v20, 0.0 }
 0x15e   :  { %v389_v12 = vpop.f32.mrf.mxu1  ;;  %v2075_v16 = vpop.f32.mrf.mxu2 }
 0x15f   :  { %v390_v53 = vadd.f32 %v389_v12, %v1866_v52 }
 0x161   :  { %v488_v36 = vmax.f32 %v390_v53, 0.0  ;;  %1246 = vmatmul.msk.f32.gmra.mxu1 %vm78_vm0, %v1725_v2  ;;  %v519_v53 = vmax.f32 %v307_v62, 0.0  ;;  %v615_v62 = vadd.f32 %v2042_v50, %v2075_v16 }
 0x163   :  { %664 = vmatmul.f32.gmra.mxu2 %v509_v37  ;;  %762 = vmatmul.f32.gmra.mxu3 %v488_v36 }
 0x166   :  { %v392_v54 = vpop.f32.mrf.mxu1  ;;  %v715_v26 = vpop.f32.mrf.mxu3 }
 0x167   :  { %v393_v43 = vadd.f32 %v392_v54, %v1866_v52  ;;  %v716_v60 = vadd.f32 %v715_v26, %v585_v51  ;;  %v2084_v38 = vpop.f32.mrf.mxu2 }
 0x169   :  { %v490_v56 = vmax.f32 %v393_v43, 0.0  ;;  %1247 = vmatmul.msk.f32.gmra.mxu1 %vm78_vm0, %v1746_v14  ;;  %v829_v2 = vmax.f32 %v716_v60, 0.0  ;;  %v521_v43 = vmax.f32 %v310_v42, 0.0 }
 0x16b   :  { %667 = vmatmul.f32.gmra.mxu2 %v511_v18  ;;  %765 = vmatmul.f32.gmra.mxu3 %v490_v56  ;;  %v603_v18 = vadd.f32 %v2042_v50, %v2027_v9  ;;  %v316_v9 = vadd.f32 %v2011_v25, %v1710_v57 }
 0x16c   :  { %903 = vmatmul.f32.vlgmr.msrb.gmra.mxu0 %v829_v2 }
 0x16e   :  { %v395_v44 = vpop.f32.mrf.mxu1  ;;  %v718_v29 = vpop.f32.mrf.mxu3 }
 0x16f   :  { %v396_v61 = vadd.f32 %v395_v44, %v1866_v52  ;;  %v719_v3 = vadd.f32 %v718_v29, %v588_v5  ;;  %v2094_v26 = vpop.f32.mrf.mxu2 }
 0x171   :  { %v492_v22 = vmax.f32 %v396_v61, 0.0  ;;  %1248 = vmatmul.msk.f32.gmra.mxu1 %vm78_vm0, %v1767_v35  ;;  %v830_v14 = vmax.f32 %v719_v3, 0.0  ;;  %v606_v3 = vadd.f32 %v2042_v50, %v2036_v23  ;;  %v319_v23 = vadd.f32 %v2023_v28, %v1710_v57 }
 0x173   :  { %670 = vmatmul.f32.gmra.mxu2 %v513_v11  ;;  %768 = vmatmul.f32.gmra.mxu3 %v492_v22 }
 0x174   :  { %906 = vmatmul.f32.gmra.mxu0 %v830_v14 }
 0x176   :  { %v398_v32 = vpop.f32.mrf.mxu1  ;;  %v721_v8 = vpop.f32.mrf.mxu3 }
 0x177   :  { %v399_v7 = vadd.f32 %v398_v32, %v1866_v52  ;;  %v722_v63 = vadd.f32 %v721_v8, %v591_v33  ;;  %v2101_v29 = vpop.f32.mrf.mxu2  ;;  %v525_v33 = vmax.f32 %v316_v9, 0.0 }
 0x179   :  { %v494_v30 = vmax.f32 %v399_v7, 0.0  ;;  %1249 = vmatmul.msk.f32.gmra.mxu1 %vm78_vm0, %v1785_v47  ;;  %v831_v35 = vmax.f32 %v722_v63, 0.0  ;;  %v609_v7 = vadd.f32 %v2042_v50, %v2051_v58  ;;  %v322_v58 = vadd.f32 %v2034_v48, %v1710_v57 }
 0x17b   :  { %673 = vmatmul.f32.gmra.mxu2 %v515_v17  ;;  %771 = vmatmul.f32.gmra.mxu3 %v494_v30 }
 0x17c   :  { %909 = vmatmul.f32.gmra.mxu0 %v831_v35  ;;  %v527_v35 = vmax.f32 %v319_v23, 0.0 }
 0x17e   :  { %v401_v24 = vpop.f32.mrf.mxu1  ;;  %v724_v27 = vpop.f32.mrf.mxu3 }
 0x17f   :  { %v402_v39 = vadd.f32 %v401_v24, %v1866_v52  ;;  %v725_v6 = vadd.f32 %v724_v27, %v594_v31  ;;  %v2112_v8 = vpop.f32.mrf.mxu2  ;;  %v612_v24 = vadd.f32 %v2042_v50, %v2062_v13 }
 0x181   :  { %v496_v41 = vmax.f32 %v402_v39, 0.0  ;;  %1250 = vmatmul.msk.f32.gmra.mxu1 %vm78_vm0, %v1806_v55  ;;  %v832_v47 = vmax.f32 %v725_v6, 0.0 }
 0x183   :  { %676 = vmatmul.f32.gmra.mxu2 %v517_v19  ;;  %774 = vmatmul.f32.gmra.mxu3 %v496_v41  ;;  %v529_v41 = vmax.f32 %v322_v58, 0.0 }
 0x184   :  { %912 = vmatmul.f32.gmra.mxu0 %v832_v47 }
 0x186   :  { %v404_v45 = vpop.f32.mrf.mxu1  ;;  %v727_v46 = vpop.f32.mrf.mxu3 }
 0x187   :  { %v405_v21 = vadd.f32 %v404_v45, %v1866_v52  ;;  %v728_v12 = vadd.f32 %v727_v46, %v597_v49  ;;  %v629_v39 = vpop.f32.mrf.mxu2 }
 0x189   :  { %v498_v37 = vmax.f32 %v405_v21, 0.0  ;;  %1251 = vmatmul.msk.f32.gmra.mxu1 %vm78_vm0, %v1829_v4  ;;  %v833_v55 = vmax.f32 %v728_v12, 0.0 }
 0x18b   :  { %679 = vmatmul.f32.gmra.mxu2 %v519_v53  ;;  %777 = vmatmul.f32.gmra.mxu3 %v498_v37  ;;  %v618_v53 = vadd.f32 %v2042_v50, %v2084_v38 }
 0x18c   :  { %915 = vmatmul.f32.gmra.mxu0 %v833_v55 }
 0x18e   :  { %v407_v36 = vpop.f32.mrf.mxu1  ;;  %v730_v0 = vpop.f32.mrf.mxu3 }
 0x18f   :  { %v408_v51 = vadd.f32 %v407_v36, %v1866_v52  ;;  %v731_v54 = vadd.f32 %v730_v0, %v600_v1  ;;  %v632_v48 = vpop.f32.mrf.mxu2  ;;  %v621_v0 = vadd.f32 %v2042_v50, %v2094_v26 }
 0x191   :  { %v500_v60 = vmax.f32 %v408_v51, 0.0  ;;  %v834_v4 = vmax.f32 %v731_v54, 0.0 }
 0x193   :  { %682 = vmatmul.f32.gmra.mxu2 %v521_v43  ;;  %780 = vmatmul.f32.gmra.mxu3 %v500_v60 }
 0x194   :  { %918 = vmatmul.f32.gmra.mxu0 %v834_v4 }
 0x196   :  { %v410_v15 = vpop.f32.mrf.mxu1  ;;  %v733_v2 = vpop.f32.mrf.mxu3 }
 0x197   :  { %v411_v56 = vadd.f32 %v410_v15, %v1866_v52  ;;  %v734_v5 = vadd.f32 %v733_v2, %v603_v18  ;;  %v635_v51 = vpop.f32.mrf.mxu2  ;;  %v624_v15 = vadd.f32 %v2042_v50, %v2101_v29 }
 0x199   :  { %v502_v44 = vmax.f32 %v411_v56, 0.0  ;;  %v835_v61 = vmax.f32 %v734_v5, 0.0 }
 0x19b   :  { %685 = vmatmul.f32.gmra.mxu2 %v523_v10  ;;  %783 = vmatmul.f32.gmra.mxu3 %v502_v44 }
 0x19c   :  { %921 = vmatmul.f32.gmra.mxu0 %v835_v61  ;;  %v627_v61 = vadd.f32 %v2042_v50, %v2112_v8 }
 0x19e   :  { %v413_v59 = vpop.f32.mrf.mxu1  ;;  %v736_v22 = vpop.f32.mrf.mxu3 }
 0x19f   :  { %v414_v11 = vadd.f32 %v413_v59, %v1866_v52  ;;  %v737_v14 = vadd.f32 %v736_v22, %v606_v3  ;;  %v638_v20 = vpop.f32.mrf.mxu2 }
 0x1a1   :  { %v504_v34 = vmax.f32 %v414_v11, 0.0  ;;  %v836_v32 = vmax.f32 %v737_v14, 0.0 }
 0x1a3   :  { %688 = vmatmul.f32.gmra.mxu2 %v525_v33  ;;  %786 = vmatmul.f32.gmra.mxu3 %v504_v34  ;;  %v630_v33 = vadd.f32 %v2042_v50, %v629_v39 }
 0x1a4   :  { %924 = vmatmul.f32.gmra.mxu0 %v836_v32 }
 0x1a6   :  { %v416_v25 = vpop.f32.mrf.mxu1  ;;  %v739_v17 = vpop.f32.mrf.mxu3 }
 0x1a7   :  { %v417_v63 = vadd.f32 %v416_v25, %v1866_v52  ;;  %v740_v30 = vadd.f32 %v739_v17, %v609_v7  ;;  %v2134_v9 = vpop.f32.mrf.mxu2  ;;  %v633_v17 = vadd.f32 %v2042_v50, %v632_v48 }
 0x1a9   :  { %v506_v31 = vmax.f32 %v417_v63, 0.0  ;;  %v837_v40 = vmax.f32 %v740_v30, 0.0 }
 0x1ab   :  { %691 = vmatmul.f32.gmra.mxu2 %v527_v35  ;;  %789 = vmatmul.f32.gmra.mxu3 %v506_v31  ;;  %v2145_v35 = vld [vmem:[%s2376_s6] ss:$0 sm:$0xff] }
 0x1ac   :  { %927 = vmatmul.f32.gmra.mxu0 %v837_v40 }
 0x1ae   :  { %v419_v28 = vpop.f32.mrf.mxu1  ;;  %v742_v6 = vpop.f32.mrf.mxu3 }
 0x1af   :  { %v420_v27 = vadd.f32 %v419_v28, %v1866_v52  ;;  %v743_v19 = vadd.f32 %v742_v6, %v612_v24  ;;  %v2139_v25 = vpop.f32.mrf.mxu2 }
 0x1b1   :  { %v508_v47 = vmax.f32 %v420_v27, 0.0  ;;  %v838_v49 = vmax.f32 %v743_v19, 0.0 }
 0x1b3   :  { %694 = vmatmul.f32.gmra.mxu2 %v529_v41  ;;  %792 = vmatmul.f32.gmra.mxu3 %v508_v47  ;;  %v636_v41 = vadd.f32 %v2042_v50, %v635_v51 }
 0x1b4   :  { %930 = vmatmul.f32.gmra.mxu0 %v838_v49 }
 0x1b6   :  { %v422_v13 = vpop.f32.mrf.mxu1  ;;  %v745_v21 = vpop.f32.mrf.mxu3 }
 0x1b7   :  { %v423_v45 = vadd.f32 %v422_v13, %v1866_v52  ;;  %v746_v57 = vadd.f32 %v745_v21, %v615_v62  ;;  %v2149_v6 = vpop.f32.mrf.mxu2 }
 0x1b9   :  { %v510_v46 = vmax.f32 %v423_v45, 0.0  ;;  %v839_v12 = vmax.f32 %v746_v57, 0.0 }
 0x1bb   :  { %795 = vmatmul.f32.gmra.mxu3 %v510_v46 }
 0x1bc   :  { %933 = vmatmul.f32.gmra.mxu0 %v839_v12 }
 0x1be   :  { %v425_v37 = vpop.f32.mrf.mxu1  ;;  %v748_v1 = vpop.f32.mrf.mxu3 }
 0x1bf   :  { %v426_v55 = vadd.f32 %v425_v37, %v1866_v52  ;;  %v749_v42 = vadd.f32 %v748_v1, %v618_v53  ;;  %v2154_v53 = vpop.f32.mrf.mxu2 }
 0x1c1   :  { %v512_v16 = vmax.f32 %v426_v55, 0.0  ;;  %v840_v36 = vmax.f32 %v749_v42, 0.0  ;;  %v639_v55 = vadd.f32 %v2042_v50, %v638_v20 }
 0x1c3   :  { %798 = vmatmul.f32.gmra.mxu3 %v512_v16 }
 0x1c4   :  { %936 = vmatmul.f32.gmra.mxu0 %v840_v36 }
 0x1c6   :  { %v428_v54 = vpop.f32.mrf.mxu1  ;;  %v751_v60 = vpop.f32.mrf.mxu3 }
 0x1c7   :  { %v429_v43 = vadd.f32 %v428_v54, %v1866_v52  ;;  %v752_v4 = vadd.f32 %v751_v60, %v621_v0 }
 0x1c9   :  { %v514_v18 = vmax.f32 %v429_v43, 0.0  ;;  %v841_v38 = vmax.f32 %v752_v4, 0.0 }
 0x1cb   :  { %801 = vmatmul.f32.gmra.mxu3 %v514_v18 }
 0x1cc   :  { %939 = vmatmul.f32.gmra.mxu0 %v841_v38  ;;  %v642_v38 = vadd.f32 %v2042_v50, %v2134_v9 }
 0x1ce   :  { %v431_v56 = vpop.f32.mrf.mxu1  ;;  %v754_v5 = vpop.f32.mrf.mxu3 }
 0x1cf   :  { %v432_v2 = vadd.f32 %v431_v56, %v1866_v52  ;;  %v755_v10 = vadd.f32 %v754_v5, %v624_v15  ;;  %v653_v15 = vpop.f32.mrf.mxu2 }
 0x1d1   :  { %v516_v44 = vmax.f32 %v432_v2, 0.0  ;;  %v842_v26 = vmax.f32 %v755_v10, 0.0 }
 0x1d3   :  { %804 = vmatmul.f32.gmra.mxu3 %v516_v44 }
 0x1d4   :  { %942 = vmatmul.f32.gmra.mxu0 %v842_v26 }
 0x1d6   :  { %v434_v3 = vpop.f32.mrf.mxu1  ;;  %v757_v11 = vpop.f32.mrf.mxu3 }
 0x1d7   :  { %v435_v59 = vadd.f32 %v434_v3, %v1866_v52  ;;  %v758_v22 = vadd.f32 %v757_v11, %v627_v61  ;;  %v645_v11 = vadd.f32 %v2042_v50, %v2139_v25 }
 0x1d9   :  { %v518_v29 = vmax.f32 %v435_v59, 0.0  ;;  %v843_v14 = vmax.f32 %v758_v22, 0.0 }
 0x1db   :  { %807 = vmatmul.f32.gmra.mxu3 %v518_v29 }
 0x1dc   :  { %945 = vmatmul.f32.gmra.mxu0 %v843_v14 }
 0x1de   :  { %v437_v34 = vpop.f32.mrf.mxu1  ;;  %v760_v7 = vpop.f32.mrf.mxu3 }
 0x1df   :  { %v438_v32 = vadd.f32 %v437_v34, %v1866_v52  ;;  %v761_v23 = vadd.f32 %v760_v7, %v630_v33  ;;  %v656_v34 = vpop.f32.mrf.mxu2 }
 0x1e1   :  { %v520_v8 = vmax.f32 %v438_v32, 0.0  ;;  %v844_v63 = vmax.f32 %v761_v23, 0.0 }
 0x1e3   :  { %810 = vmatmul.f32.gmra.mxu3 %v520_v8 }
 0x1e4   :  { %948 = vmatmul.f32.gmra.mxu0 %v844_v63 }
 0x1e6   :  { %v440_v30 = vpop.f32.mrf.mxu1  ;;  %v763_v40 = vpop.f32.mrf.mxu3 }
 0x1e7   :  { %v441_v31 = vadd.f32 %v440_v30, %v1866_v52  ;;  %v764_v24 = vadd.f32 %v763_v40, %v633_v17  ;;  %v648_v30 = vadd.f32 %v2042_v50, %v2149_v6  ;;  %v651_v6 = vadd.f32 %v2042_v50, %v2154_v53 }
 0x1e9   :  { %v522_v58 = vmax.f32 %v441_v31, 0.0  ;;  %v904_v28 = vpop.f32.mrf.mxu0  ;;  %v845_v39 = vmax.f32 %v764_v24, 0.0 }
 0x1ea   :  { %v905_v27 = vadd.f32 %v2145_v35, %v904_v28  ;;  %v659_v28 = vpop.f32.mrf.mxu2 }
 0x1eb   :  { %813 = vmatmul.f32.gmra.mxu3 %v522_v58 }
 0x1ec   :  { %v1018_v19 = vmul.f32 0.5, %v905_v27  ;;  %951 = vmatmul.f32.gmra.mxu0 %v845_v39 }
 0x1ee   :  { %1282 = vtanh.f32 %v1018_v19  ;;  %v443_v47 = vpop.f32.mrf.mxu1  ;;  %v766_v62 = vpop.f32.mrf.mxu3 }
 0x1ef   :  { %v444_v49 = vadd.f32 %v443_v47, %v1866_v52  ;;  %v767_v13 = vadd.f32 %v766_v62, %v636_v41 }
 0x1f1   :  { %v524_v45 = vmax.f32 %v444_v49, 0.0  ;;  %v907_v21 = vpop.f32.mrf.mxu0  ;;  %v846_v57 = vmax.f32 %v767_v13, 0.0 }
 0x1f2   :  { %v908_v48 = vadd.f32 %v2145_v35, %v907_v21 }
 0x1f3   :  { %816 = vmatmul.f32.gmra.mxu3 %v524_v45 }
 0x1f4   :  { %v1283_v46 = vpop.eup %1282  ;;  %v1019_v12 = vmul.f32 0.5, %v908_v48  ;;  %954 = vmatmul.f32.gmra.mxu0 %v846_v57  ;;  %v662_v57 = vpop.f32.mrf.mxu2 }
 0x1f5   :  { %v1094_v37 = vmul.f32 2.0, %v1283_v46  ;;  %v654_v46 = vadd.f32 %v2042_v50, %v653_v15 }
 0x1f6   :  { %1284 = vtanh.f32 %v1019_v12  ;;  %v446_v1 = vpop.f32.mrf.mxu1  ;;  %v769_v16 = vpop.f32.mrf.mxu3 }
 0x1f7   :  { %1133 = vst.msk [vmem:[%s2377_s7] sm:$0xff] %vm1132_vm1, %v1094_v37  ;;  %v447_v42 = vadd.f32 %v446_v1, %v1866_v52  ;;  %v770_v36 = vadd.f32 %v769_v16, %v639_v55 }
 0x1f9   :  { %v526_v51 = vmax.f32 %v447_v42, 0.0  ;;  %v910_v0 = vpop.f32.mrf.mxu0  ;;  %v847_v54 = vmax.f32 %v770_v36, 0.0 }
 0x1fa   :  { %v911_v43 = vadd.f32 %v2145_v35, %v910_v0 }
 0x1fb   :  { %819 = vmatmul.f32.gmra.mxu3 %v526_v51  ;;  %v657_v51 = vadd.f32 %v2042_v50, %v656_v34 }
 0x1fc   :  { %v1285_v60 = vpop.eup %1284  ;;  %v1020_v4 = vmul.f32 0.5, %v911_v43  ;;  %957 = vmatmul.f32.gmra.mxu0 %v847_v54  ;;  %v665_v0 = vpop.f32.mrf.mxu2 }
 0x1fd   :  { %v1095_v18 = vmul.f32 2.0, %v1285_v60 }
 0x1fe   :  { %1286 = vtanh.f32 %v1020_v4  ;;  %v449_v20 = vpop.f32.mrf.mxu1  ;;  %v772_v2 = vpop.f32.mrf.mxu3 }
 0x1ff   :  { %1134 = vst.msk [vmem:[%s2377_s7 + $0x8] sm:$0xff] %vm1132_vm1, %v1095_v18  ;;  %v450_v56 = vadd.f32 %v449_v20, %v1866_v52  ;;  %v773_v5 = vadd.f32 %v772_v2, %v642_v38 }
 0x201   :  { %v528_v10 = vmax.f32 %v450_v56, 0.0  ;;  %v913_v44 = vpop.f32.mrf.mxu0  ;;  %v848_v26 = vmax.f32 %v773_v5, 0.0  ;;  %v660_v56 = vadd.f32 %v2042_v50, %v659_v28 }
 0x202   :  { %v914_v61 = vadd.f32 %v2145_v35, %v913_v44 }
 0x203   :  { %822 = vmatmul.f32.gmra.mxu3 %v528_v10 }
 0x204   :  { %v1287_v3 = vpop.eup %1286  ;;  %v1021_v9 = vmul.f32 0.5, %v914_v61  ;;  %960 = vmatmul.f32.gmra.mxu0 %v848_v26  ;;  %v668_v10 = vpop.f32.mrf.mxu2 }
 0x205   :  { %v1096_v59 = vmul.f32 2.0, %v1287_v3 }
 0x206   :  { %1288 = vtanh.f32 %v1021_v9  ;;  %v452_v22 = vpop.f32.mrf.mxu1  ;;  %v775_v14 = vpop.f32.mrf.mxu3 }
 0x207   :  { %1135 = vst.msk [vmem:[%s2377_s7 + $0x10] sm:$0xff] %vm1132_vm1, %v1096_v59  ;;  %v453_v29 = vadd.f32 %v452_v22, %v1866_v52  ;;  %v776_v33 = vadd.f32 %v775_v14, %v645_v11  ;;  %v663_v11 = vadd.f32 %v2042_v50, %v662_v57 }
 0x209   :  { %v530_v32 = vmax.f32 %v453_v29, 0.0  ;;  %v916_v7 = vpop.f32.mrf.mxu0  ;;  %v849_v23 = vmax.f32 %v776_v33, 0.0 }
 0x20a   :  { %v917_v8 = vadd.f32 %v2145_v35, %v916_v7 }
 0x20b   :  { %825 = vmatmul.f32.gmra.mxu3 %v530_v32 }
 0x20c   :  { %v1289_v63 = vpop.eup %1288  ;;  %v1022_v25 = vmul.f32 0.5, %v917_v8  ;;  %963 = vmatmul.f32.gmra.mxu0 %v849_v23  ;;  %v671_v32 = vpop.f32.mrf.mxu2 }
 0x20d   :  { %v1097_v17 = vmul.f32 2.0, %v1289_v63  ;;  %v666_v63 = vadd.f32 %v2042_v50, %v665_v0 }
 0x20e   :  { %1290 = vtanh.f32 %v1022_v25  ;;  %v778_v52 = vpop.f32.mrf.mxu3 }
 0x20f   :  { %1136 = vst.msk [vmem:[%s2377_s7 + $0x18] sm:$0xff] %vm1132_vm1, %v1097_v17  ;;  %v779_v31 = vadd.f32 %v778_v52, %v648_v30 }
 0x211   :  { %v919_v40 = vpop.f32.mrf.mxu0  ;;  %v850_v24 = vmax.f32 %v779_v31, 0.0 }
 0x212   :  { %v920_v58 = vadd.f32 %v2145_v35, %v919_v40 }
 0x214   :  { %v1291_v39 = vpop.eup %1290  ;;  %v1023_v27 = vmul.f32 0.5, %v920_v58  ;;  %966 = vmatmul.f32.gmra.mxu0 %v850_v24  ;;  %v674_v58 = vpop.f32.mrf.mxu2 }
 0x215   :  { %v1098_v19 = vmul.f32 2.0, %v1291_v39  ;;  %v669_v39 = vadd.f32 %v2042_v50, %v668_v10 }
 0x216   :  { %1292 = vtanh.f32 %v1023_v27  ;;  %v781_v41 = vpop.f32.mrf.mxu3 }
 0x217   :  { %1137 = vst.msk [vmem:[%s2377_s7 + $0x20] sm:$0xff] %vm1132_vm1, %v1098_v19  ;;  %v782_v47 = vadd.f32 %v781_v41, %v651_v6 }
 0x219   :  { %v922_v49 = vpop.f32.mrf.mxu0  ;;  %v851_v62 = vmax.f32 %v782_v47, 0.0 }
 0x21a   :  { %v923_v13 = vadd.f32 %v2145_v35, %v922_v49 }
 0x21c   :  { %v1293_v45 = vpop.eup %1292  ;;  %v1024_v21 = vmul.f32 0.5, %v923_v13  ;;  %969 = vmatmul.f32.gmra.mxu0 %v851_v62 }
 0x21d   :  { %v1099_v48 = vmul.f32 2.0, %v1293_v45  ;;  %v672_v45 = vadd.f32 %v2042_v50, %v671_v32 }
 0x21e   :  { %1294 = vtanh.f32 %v1024_v21  ;;  %v784_v12 = vpop.f32.mrf.mxu3  ;;  %v677_v21 = vpop.f32.mrf.mxu2 }
 0x21f   :  { %1138 = vst.msk [vmem:[%s2377_s7 + $0x28] sm:$0xff] %vm1132_vm1, %v1099_v48  ;;  %v785_v53 = vadd.f32 %v784_v12, %v654_v46 }
 0x221   :  { %v925_v37 = vpop.f32.mrf.mxu0  ;;  %v852_v55 = vmax.f32 %v785_v53, 0.0 }
 0x222   :  { %v926_v1 = vadd.f32 %v2145_v35, %v925_v37 }
 0x224   :  { %v1295_v42 = vpop.eup %1294  ;;  %v1025_v16 = vmul.f32 0.5, %v926_v1  ;;  %972 = vmatmul.f32.gmra.mxu0 %v852_v55 }
 0x225   :  { %v1100_v36 = vmul.f32 2.0, %v1295_v42  ;;  %v675_v42 = vadd.f32 %v2042_v50, %v674_v58 }
 0x226   :  { %1296 = vtanh.f32 %v1025_v16  ;;  %v787_v54 = vpop.f32.mrf.mxu3 }
 0x227   :  { %1139 = vst.msk [vmem:[%s2377_s7 + $0x30] sm:$0xff] %vm1132_vm1, %v1100_v36  ;;  %v788_v43 = vadd.f32 %v787_v54, %v657_v51  ;;  %v680_v51 = vpop.f32.mrf.mxu2 }
 0x229   :  { %v928_v60 = vpop.f32.mrf.mxu0  ;;  %v853_v4 = vmax.f32 %v788_v43, 0.0 }
 0x22a   :  { %v929_v18 = vadd.f32 %v2145_v35, %v928_v60 }
 0x22c   :  { %v1297_v38 = vpop.eup %1296  ;;  %v1026_v20 = vmul.f32 0.5, %v929_v18  ;;  %975 = vmatmul.f32.gmra.mxu0 %v853_v4 }
 0x22d   :  { %v1101_v15 = vmul.f32 2.0, %v1297_v38  ;;  %v678_v38 = vadd.f32 %v2042_v50, %v677_v21 }
 0x22e   :  { %1298 = vtanh.f32 %v1026_v20  ;;  %v790_v2 = vpop.f32.mrf.mxu3 }
 0x22f   :  { %1140 = vst.msk [vmem:[%s2377_s7 + $0x38] sm:$0xff] %vm1132_vm1, %v1101_v15  ;;  %v791_v5 = vadd.f32 %v790_v2, %v660_v56  ;;  %v683_v10 = vpop.f32.mrf.mxu2 }
 0x231   :  { %v931_v44 = vpop.f32.mrf.mxu0  ;;  %v854_v26 = vmax.f32 %v791_v5, 0.0 }
 0x232   :  { %v932_v61 = vadd.f32 %v2145_v35, %v931_v44 }
 0x234   :  { %v1299_v3 = vpop.eup %1298  ;;  %v1027_v9 = vmul.f32 0.5, %v932_v61  ;;  %978 = vmatmul.f32.gmra.mxu0 %v854_v26 }
 0x235   :  { %v1102_v59 = vmul.f32 2.0, %v1299_v3  ;;  %v681_v3 = vadd.f32 %v2042_v50, %v680_v51 }
 0x236   :  { %1300 = vtanh.f32 %v1027_v9  ;;  %v793_v22 = vpop.f32.mrf.mxu3 }
 0x237   :  { %1141 = vst.msk [vmem:[%s2377_s7 + $0x40] sm:$0xff] %vm1132_vm1, %v1102_v59  ;;  %v794_v29 = vadd.f32 %v793_v22, %v663_v11 }
 0x239   :  { %v934_v14 = vpop.f32.mrf.mxu0  ;;  %v855_v33 = vmax.f32 %v794_v29, 0.0 }
 0x23a   :  { %v935_v34 = vadd.f32 %v2145_v35, %v934_v14 }
 0x23c   :  { %v1301_v7 = vpop.eup %1300  ;;  %v1028_v23 = vmul.f32 0.5, %v935_v34  ;;  %981 = vmatmul.f32.gmra.mxu0 %v855_v33  ;;  %v686_v34 = vpop.f32.mrf.mxu2 }
 0x23d   :  { %v1103_v8 = vmul.f32 2.0, %v1301_v7  ;;  %v684_v7 = vadd.f32 %v2042_v50, %v683_v10 }
 0x23e   :  { %1302 = vtanh.f32 %v1028_v23  ;;  %v796_v25 = vpop.f32.mrf.mxu3 }
 0x23f   :  { %1142 = vst.msk [vmem:[%s2377_s7 + $0x48] sm:$0xff] %vm1132_vm1, %v1103_v8  ;;  %v797_v17 = vadd.f32 %v796_v25, %v666_v63 }
 0x241   :  { %v937_v30 = vpop.f32.mrf.mxu0  ;;  %v856_v52 = vmax.f32 %v797_v17, 0.0 }
 0x242   :  { %v938_v31 = vadd.f32 %v2145_v35, %v937_v30 }
 0x244   :  { %v1303_v40 = vpop.eup %1302  ;;  %v1029_v24 = vmul.f32 0.5, %v938_v31  ;;  %984 = vmatmul.f32.gmra.mxu0 %v856_v52 }
 0x245   :  { %v1104_v28 = vmul.f32 2.0, %v1303_v40  ;;  %v687_v40 = vadd.f32 %v2042_v50, %v686_v34 }
 0x246   :  { %1304 = vtanh.f32 %v1029_v24  ;;  %v799_v27 = vpop.f32.mrf.mxu3  ;;  %v689_v24 = vpop.f32.mrf.mxu2 }
 0x247   :  { %1143 = vst.msk [vmem:[%s2377_s7 + $0x50] sm:$0xff] %vm1132_vm1, %v1104_v28  ;;  %v800_v19 = vadd.f32 %v799_v27, %v669_v39 }
 0x249   :  { %v940_v6 = vpop.f32.mrf.mxu0  ;;  %v857_v41 = vmax.f32 %v800_v19, 0.0 }
 0x24a   :  { %v941_v47 = vadd.f32 %v2145_v35, %v940_v6 }
 0x24c   :  { %v1305_v49 = vpop.eup %1304  ;;  %v1030_v62 = vmul.f32 0.5, %v941_v47  ;;  %987 = vmatmul.f32.gmra.mxu0 %v857_v41 }
 0x24d   :  { %v1105_v13 = vmul.f32 2.0, %v1305_v49  ;;  %v690_v49 = vadd.f32 %v2042_v50, %v689_v24 }
 0x24e   :  { %1306 = vtanh.f32 %v1030_v62  ;;  %v802_v57 = vpop.f32.mrf.mxu3 }
 0x24f   :  { %1144 = vst.msk [vmem:[%s2377_s7 + $0x58] sm:$0xff] %vm1132_vm1, %v1105_v13  ;;  %v803_v48 = vadd.f32 %v802_v57, %v672_v45  ;;  %v692_v45 = vpop.f32.mrf.mxu2 }
 0x251   :  { %v943_v46 = vpop.f32.mrf.mxu0  ;;  %v858_v12 = vmax.f32 %v803_v48, 0.0 }
 0x252   :  { %v944_v53 = vadd.f32 %v2145_v35, %v943_v46 }
 0x254   :  { %v1307_v37 = vpop.eup %1306  ;;  %v1031_v55 = vmul.f32 0.5, %v944_v53  ;;  %990 = vmatmul.f32.gmra.mxu0 %v858_v12 }
 0x255   :  { %v1106_v1 = vmul.f32 2.0, %v1307_v37  ;;  %v693_v37 = vadd.f32 %v2042_v50, %v692_v45 }
 0x256   :  { %1308 = vtanh.f32 %v1031_v55  ;;  %v805_v16 = vpop.f32.mrf.mxu3 }
 0x257   :  { %1145 = vst.msk [vmem:[%s2377_s7 + $0x60] sm:$0xff] %vm1132_vm1, %v1106_v1  ;;  %v806_v36 = vadd.f32 %v805_v16, %v675_v42  ;;  %v695_v51 = vpop.f32.mrf.mxu2 }
 0x259   :  { %v946_v0 = vpop.f32.mrf.mxu0  ;;  %v859_v54 = vmax.f32 %v806_v36, 0.0 }
 0x25a   :  { %v947_v43 = vadd.f32 %v2145_v35, %v946_v0 }
 0x25c   :  { %v1309_v60 = vpop.eup %1308  ;;  %v1032_v4 = vmul.f32 0.5, %v947_v43  ;;  %993 = vmatmul.f32.gmra.mxu0 %v859_v54 }
 0x25d   :  { %v1107_v18 = vmul.f32 2.0, %v1309_v60  ;;  %v696_v60 = vadd.f32 %v2042_v50, %v695_v51 }
 0x25e   :  { %1310 = vtanh.f32 %v1032_v4  ;;  %v808_v20 = vpop.f32.mrf.mxu3 }
 0x25f   :  { %1146 = vst.msk [vmem:[%s2377_s7 + $0x68] sm:$0xff] %vm1132_vm1, %v1107_v18  ;;  %v809_v15 = vadd.f32 %v808_v20, %v678_v38 }
 0x261   :  { %v949_v56 = vpop.f32.mrf.mxu0  ;;  %v860_v2 = vmax.f32 %v809_v15, 0.0 }
 0x262   :  { %v950_v5 = vadd.f32 %v2145_v35, %v949_v56 }
 0x264   :  { %v1311_v44 = vpop.eup %1310  ;;  %v1033_v26 = vmul.f32 0.5, %v950_v5  ;;  %996 = vmatmul.f32.gmra.mxu0 %v860_v2 }
 0x265   :  { %v1108_v61 = vmul.f32 2.0, %v1311_v44 }
 0x266   :  { %1312 = vtanh.f32 %v1033_v26  ;;  %v811_v9 = vpop.f32.mrf.mxu3 }
 0x267   :  { %1147 = vst.msk [vmem:[%s2377_s7 + $0x70] sm:$0xff] %vm1132_vm1, %v1108_v61  ;;  %v812_v59 = vadd.f32 %v811_v9, %v681_v3 }
 0x269   :  { %v952_v11 = vpop.f32.mrf.mxu0  ;;  %v861_v22 = vmax.f32 %v812_v59, 0.0 }
 0x26a   :  { %v953_v29 = vadd.f32 %v2145_v35, %v952_v11 }
 0x26c   :  { %v1313_v14 = vpop.eup %1312  ;;  %v1034_v33 = vmul.f32 0.5, %v953_v29  ;;  %999 = vmatmul.f32.gmra.mxu0 %v861_v22 }
 0x26d   :  { %v1109_v32 = vmul.f32 2.0, %v1313_v14 }
 0x26e   :  { %1314 = vtanh.f32 %v1034_v33  ;;  %v814_v23 = vpop.f32.mrf.mxu3 }
 0x26f   :  { %1148 = vst.msk [vmem:[%s2377_s7 + $0x78] sm:$0xff] %vm1132_vm1, %v1109_v32  ;;  %v815_v8 = vadd.f32 %v814_v23, %v684_v7 }
 0x271   :  { %v955_v63 = vpop.f32.mrf.mxu0  ;;  %v862_v25 = vmax.f32 %v815_v8, 0.0 }
 0x272   :  { %v956_v17 = vadd.f32 %v2145_v35, %v955_v63 }
 0x274   :  { %v1315_v30 = vpop.eup %1314  ;;  %v1035_v52 = vmul.f32 0.5, %v956_v17  ;;  %1002 = vmatmul.f32.gmra.mxu0 %v862_v25 }
 0x275   :  { %v1110_v31 = vmul.f32 2.0, %v1315_v30 }
 0x276   :  { %1316 = vtanh.f32 %v1035_v52  ;;  %v817_v58 = vpop.f32.mrf.mxu3 }
 0x277   :  { %1149 = vst.msk [vmem:[%s2377_s7 + $0x80] sm:$0xff] %vm1132_vm1, %v1110_v31  ;;  %v818_v28 = vadd.f32 %v817_v58, %v687_v40 }
 0x279   :  { %v958_v39 = vpop.f32.mrf.mxu0  ;;  %v863_v27 = vmax.f32 %v818_v28, 0.0 }
 0x27a   :  { %v959_v19 = vadd.f32 %v2145_v35, %v958_v39 }
 0x27c   :  { %v1317_v6 = vpop.eup %1316  ;;  %v1036_v41 = vmul.f32 0.5, %v959_v19  ;;  %1005 = vmatmul.f32.gmra.mxu0 %v863_v27 }
 0x27d   :  { %v1111_v47 = vmul.f32 2.0, %v1317_v6 }
 0x27e   :  { %1318 = vtanh.f32 %v1036_v41  ;;  %v820_v62 = vpop.f32.mrf.mxu3 }
 0x27f   :  { %1150 = vst.msk [vmem:[%s2377_s7 + $0x88] sm:$0xff] %vm1132_vm1, %v1111_v47  ;;  %v821_v13 = vadd.f32 %v820_v62, %v690_v49 }
 0x281   :  { %v961_v21 = vpop.f32.mrf.mxu0  ;;  %v864_v57 = vmax.f32 %v821_v13, 0.0 }
 0x282   :  { %v962_v48 = vadd.f32 %v2145_v35, %v961_v21 }
 0x284   :  { %v1319_v46 = vpop.eup %1318  ;;  %v1037_v12 = vmul.f32 0.5, %v962_v48  ;;  %1008 = vmatmul.f32.gmra.mxu0 %v864_v57 }
 0x285   :  { %v1112_v53 = vmul.f32 2.0, %v1319_v46 }
 0x286   :  { %1320 = vtanh.f32 %v1037_v12  ;;  %v823_v55 = vpop.f32.mrf.mxu3 }
 0x287   :  { %1151 = vst.msk [vmem:[%s2377_s7 + $0x90] sm:$0xff] %vm1132_vm1, %v1112_v53  ;;  %v824_v1 = vadd.f32 %v823_v55, %v693_v37 }
 0x289   :  { %v964_v42 = vpop.f32.mrf.mxu0  ;;  %v865_v16 = vmax.f32 %v824_v1, 0.0 }
 0x28a   :  { %v965_v36 = vadd.f32 %v2145_v35, %v964_v42 }
 0x28c   :  { %v1321_v0 = vpop.eup %1320  ;;  %v1038_v54 = vmul.f32 0.5, %v965_v36  ;;  %1011 = vmatmul.f32.gmra.mxu0 %v865_v16 }
 0x28d   :  { %v1113_v43 = vmul.f32 2.0, %v1321_v0 }
 0x28e   :  { %1322 = vtanh.f32 %v1038_v54  ;;  %v826_v4 = vpop.f32.mrf.mxu3 }
 0x28f   :  { %1152 = vst.msk [vmem:[%s2377_s7 + $0x98] sm:$0xff] %vm1132_vm1, %v1113_v43  ;;  %v827_v18 = vadd.f32 %v826_v4, %v696_v60 }
 0x291   :  { %v967_v38 = vpop.f32.mrf.mxu0  ;;  %v866_v20 = vmax.f32 %v827_v18, 0.0 }
 0x292   :  { %v968_v15 = vadd.f32 %v2145_v35, %v967_v38 }
 0x293   :  { %1014 = vmatmul.f32.vlgmr.msra.gmra.mxu3 %v866_v20 }
 0x294   :  { %v1323_v56 = vpop.eup %1322  ;;  %v1039_v2 = vmul.f32 0.5, %v968_v15 }
 0x295   :  { %v1114_v5 = vmul.f32 2.0, %v1323_v56 }
 0x296   :  { %1324 = vtanh.f32 %v1039_v2 }
 0x297   :  { %1153 = vst.msk [vmem:[%s2377_s7 + $0xa0] sm:$0xff] %vm1132_vm1, %v1114_v5 }
 0x299   :  { %v970_v50 = vpop.f32.mrf.mxu0 }
 0x29a   :  { %v971_v10 = vadd.f32 %v2145_v35, %v970_v50 }
 0x29c   :  { %v1325_v44 = vpop.eup %1324  ;;  %v1040_v26 = vmul.f32 0.5, %v971_v10 }
 0x29d   :  { %v1115_v61 = vmul.f32 2.0, %v1325_v44 }
 0x29e   :  { %1326 = vtanh.f32 %v1040_v26 }
 0x29f   :  { %1154 = vst.msk [vmem:[%s2377_s7 + $0xa8] sm:$0xff] %vm1132_vm1, %v1115_v61 }
 0x2a1   :  { %v973_v3 = vpop.f32.mrf.mxu0 }
 0x2a2   :  { %v974_v9 = vadd.f32 %v2145_v35, %v973_v3 }
 0x2a4   :  { %v1327_v59 = vpop.eup %1326  ;;  %v1041_v11 = vmul.f32 0.5, %v974_v9 }
 0x2a5   :  { %v1116_v22 = vmul.f32 2.0, %v1327_v59 }
 0x2a6   :  { %1328 = vtanh.f32 %v1041_v11 }
 0x2a7   :  { %1155 = vst.msk [vmem:[%s2377_s7 + $0xb0] sm:$0xff] %vm1132_vm1, %v1116_v22 }
 0x2a9   :  { %v976_v29 = vpop.f32.mrf.mxu0 }
 0x2aa   :  { %v977_v14 = vadd.f32 %v2145_v35, %v976_v29 }
 0x2ac   :  { %v1329_v33 = vpop.eup %1328  ;;  %v1042_v34 = vmul.f32 0.5, %v977_v14 }
 0x2ad   :  { %v1117_v32 = vmul.f32 2.0, %v1329_v33 }
 0x2ae   :  { %1330 = vtanh.f32 %v1042_v34 }
 0x2af   :  { %1156 = vst.msk [vmem:[%s2377_s7 + $0xb8] sm:$0xff] %vm1132_vm1, %v1117_v32 }
 0x2b1   :  { %v979_v7 = vpop.f32.mrf.mxu0 }
 0x2b2   :  { %v980_v23 = vadd.f32 %v2145_v35, %v979_v7 }
 0x2b4   :  { %v1331_v8 = vpop.eup %1330  ;;  %v1043_v63 = vmul.f32 0.5, %v980_v23 }
 0x2b5   :  { %v1118_v25 = vmul.f32 2.0, %v1331_v8 }
 0x2b6   :  { %1332 = vtanh.f32 %v1043_v63 }
 0x2b7   :  { %1157 = vst.msk [vmem:[%s2377_s7 + $0xc0] sm:$0xff] %vm1132_vm1, %v1118_v25 }
 0x2b9   :  { %v982_v17 = vpop.f32.mrf.mxu0 }
 0x2ba   :  { %v983_v30 = vadd.f32 %v2145_v35, %v982_v17 }
 0x2bc   :  { %v1333_v52 = vpop.eup %1332  ;;  %v1044_v31 = vmul.f32 0.5, %v983_v30 }
 0x2bd   :  { %v1119_v40 = vmul.f32 2.0, %v1333_v52 }
 0x2be   :  { %1334 = vtanh.f32 %v1044_v31 }
 0x2bf   :  { %1158 = vst.msk [vmem:[%s2377_s7 + $0xc8] sm:$0xff] %vm1132_vm1, %v1119_v40 }
 0x2c1   :  { %v985_v24 = vpop.f32.mrf.mxu0 }
 0x2c2   :  { %v986_v58 = vadd.f32 %v2145_v35, %v985_v24 }
 0x2c4   :  { %v1335_v28 = vpop.eup %1334  ;;  %v1045_v39 = vmul.f32 0.5, %v986_v58 }
 0x2c5   :  { %v1120_v27 = vmul.f32 2.0, %v1335_v28 }
 0x2c6   :  { %1336 = vtanh.f32 %v1045_v39 }
 0x2c7   :  { %1159 = vst.msk [vmem:[%s2377_s7 + $0xd0] sm:$0xff] %vm1132_vm1, %v1120_v27 }
 0x2c9   :  { %v988_v19 = vpop.f32.mrf.mxu0 }
 0x2ca   :  { %v989_v6 = vadd.f32 %v2145_v35, %v988_v19 }
 0x2cc   :  { %v1337_v41 = vpop.eup %1336  ;;  %v1046_v47 = vmul.f32 0.5, %v989_v6 }
 0x2cd   :  { %v1121_v49 = vmul.f32 2.0, %v1337_v41 }
 0x2ce   :  { %1338 = vtanh.f32 %v1046_v47 }
 0x2cf   :  { %1160 = vst.msk [vmem:[%s2377_s7 + $0xd8] sm:$0xff] %vm1132_vm1, %v1121_v49 }
 0x2d1   :  { %v991_v62 = vpop.f32.mrf.mxu0 }
 0x2d2   :  { %v992_v13 = vadd.f32 %v2145_v35, %v991_v62 }
 0x2d4   :  { %v1339_v45 = vpop.eup %1338  ;;  %v1047_v21 = vmul.f32 0.5, %v992_v13 }
 0x2d5   :  { %v1122_v57 = vmul.f32 2.0, %v1339_v45 }
 0x2d6   :  { %1340 = vtanh.f32 %v1047_v21 }
 0x2d7   :  { %1161 = vst.msk [vmem:[%s2377_s7 + $0xe0] sm:$0xff] %vm1132_vm1, %v1122_v57 }
 0x2d9   :  { %v994_v48 = vpop.f32.mrf.mxu0 }
 0x2da   :  { %v995_v46 = vadd.f32 %v2145_v35, %v994_v48 }
 0x2dc   :  { %v1341_v12 = vpop.eup %1340  ;;  %v1048_v53 = vmul.f32 0.5, %v995_v46 }
 0x2dd   :  { %v1123_v37 = vmul.f32 2.0, %v1341_v12 }
 0x2de   :  { %1342 = vtanh.f32 %v1048_v53 }
 0x2df   :  { %1162 = vst.msk [vmem:[%s2377_s7 + $0xe8] sm:$0xff] %vm1132_vm1, %v1123_v37 }
 0x2e1   :  { %v997_v55 = vpop.f32.mrf.mxu0 }
 0x2e2   :  { %v998_v1 = vadd.f32 %v2145_v35, %v997_v55 }
 0x2e4   :  { %v1343_v42 = vpop.eup %1342  ;;  %v1049_v16 = vmul.f32 0.5, %v998_v1 }
 0x2e5   :  { %v1124_v36 = vmul.f32 2.0, %v1343_v42 }
 0x2e6   :  { %1344 = vtanh.f32 %v1049_v16 }
 0x2e7   :  { %1163 = vst.msk [vmem:[%s2377_s7 + $0xf0] sm:$0xff] %vm1132_vm1, %v1124_v36 }
 0x2e9   :  { %v1000_v51 = vpop.f32.mrf.mxu0 }
 0x2ea   :  { %v1001_v0 = vadd.f32 %v2145_v35, %v1000_v51 }
 0x2ec   :  { %v1345_v54 = vpop.eup %1344  ;;  %v1050_v43 = vmul.f32 0.5, %v1001_v0 }
 0x2ed   :  { %v1125_v60 = vmul.f32 2.0, %v1345_v54 }
 0x2ee   :  { %1346 = vtanh.f32 %v1050_v43 }
 0x2ef   :  { %1164 = vst.msk [vmem:[%s2377_s7 + $0xf8] sm:$0xff] %vm1132_vm1, %v1125_v60 }
 0x2f1   :  { %v1003_v4 = vpop.f32.mrf.mxu0 }
 0x2f2   :  { %v1004_v18 = vadd.f32 %v2145_v35, %v1003_v4 }
 0x2f4   :  { %v1347_v38 = vpop.eup %1346  ;;  %v1051_v20 = vmul.f32 0.5, %v1004_v18 }
 0x2f5   :  { %v1126_v15 = vmul.f32 2.0, %v1347_v38 }
 0x2f6   :  { %1348 = vtanh.f32 %v1051_v20 }
 0x2f7   :  { %1165 = vst.msk [vmem:[%s2377_s7 + $0x100] sm:$0xff] %vm1132_vm1, %v1126_v15 }
 0x2f9   :  { %v1006_v56 = vpop.f32.mrf.mxu0 }
 0x2fa   :  { %v1007_v2 = vadd.f32 %v2145_v35, %v1006_v56 }
 0x2fc   :  { %v1349_v5 = vpop.eup %1348  ;;  %v1052_v50 = vmul.f32 0.5, %v1007_v2 }
 0x2fd   :  { %v1127_v10 = vmul.f32 2.0, %v1349_v5 }
 0x2fe   :  { %1350 = vtanh.f32 %v1052_v50 }
 0x2ff   :  { %1166 = vst.msk [vmem:[%s2377_s7 + $0x108] sm:$0xff] %vm1132_vm1, %v1127_v10 }
 0x301   :  { %v1009_v44 = vpop.f32.mrf.mxu0 }
 0x302   :  { %v1010_v26 = vadd.f32 %v2145_v35, %v1009_v44 }
 0x304   :  { %v1351_v61 = vpop.eup %1350  ;;  %v1053_v3 = vmul.f32 0.5, %v1010_v26 }
 0x305   :  { %v1128_v9 = vmul.f32 2.0, %v1351_v61 }
 0x306   :  { %1352 = vtanh.f32 %v1053_v3 }
 0x307   :  { %1167 = vst.msk [vmem:[%s2377_s7 + $0x110] sm:$0xff] %vm1132_vm1, %v1128_v9 }
 0x309   :  { %v1012_v59 = vpop.f32.mrf.mxu0 }
 0x30a   :  { %v1013_v11 = vadd.f32 %v2145_v35, %v1012_v59 }
 0x30c   :  { %v1353_v22 = vpop.eup %1352  ;;  %v1054_v29 = vmul.f32 0.5, %v1013_v11 }
 0x30d   :  { %v1129_v14 = vmul.f32 2.0, %v1353_v22 }
 0x30e   :  { %1354 = vtanh.f32 %v1054_v29 }
 0x30f   :  { %1168 = vst.msk [vmem:[%s2377_s7 + $0x118] sm:$0xff] %vm1132_vm1, %v1129_v14 }
 0x314   :  { %v1355_v33 = vpop.eup %1354 }
 0x315   :  { %v1130_v34 = vmul.f32 2.0, %v1355_v33 }
 0x316   :  { %v1015_v32 = vpop.f32.mrf.mxu3 }
 0x317   :  { %1169 = vst.msk [vmem:[%s2377_s7 + $0x120] sm:$0xff] %vm1132_vm1, %v1130_v34  ;;  %v1016_v7 = vadd.f32 %v2145_v35, %v1015_v32 }
 0x319   :  { %v1055_v23 = vmul.f32 0.5, %v1016_v7 }
 0x31b   :  { %1356 = vtanh.f32 %v1055_v23 }
 0x321   :  { %v1357_v8 = vpop.eup %1356 }
 0x322   :  { %v1131_v63 = vmul.f32 2.0, %v1357_v8 }
 0x324   :  { %1171 = vst.msk [vmem:[%s2377_s7 + $0x128] sm:$0xf] %vm1170_vm2, %v1131_v63 }

</bundles_post_ra>
